<compile_context>
chip_gen: v7x
topology: tpu7x:2x2x1
jax: 0.10.0
libtpu: 0.0.40
codegen_flags: <defaults>
</compile_context>

<pallas_src>
import functools

import jax
import jax.numpy as jnp
import numpy as np
from jax.experimental import pallas as pl
from jax.experimental.pallas import tpu as pltpu


# ------------------------------------------------------------------ fused whole-model kernel

def _fused_hybrid_tcn_kernel(*refs, kernel_size, dilations, ch_in, ch_out,
                             has_down, pad_max, seq_len, num_fc):
    """Whole HybridTCN body (TCN stack + fc head) for ONE batch element, entirely in VMEM.

    refs = (x_seq, feat_pre,
            per TCN block: w1, b1, w2, b2[, wd, bd],
            fc layer 0: w_pre, w_tcn, b, fc layers 1..: w, b,
            out, buf_in_scratch, buf_h_scratch)
      x_seq    : (C_in0, L)          raw (unpadded) sequence for this batch element
      feat_pre : (F_pre, 1)          [embeddings | bn_cont] feature column
      w1, w2   : (K, C_out, C_*)     tap-major conv weights;  b* : (C_out, 1)
      wd, bd   : optional 1x1 downsample conv
      out      : (out_size, 1)
      buf_*    : (C_max, L + pad_max) scratch; data lives at columns [pad_max, pad_max+L),
                 columns [0, pad_max) are the causal zero padding shared by every block.
    """
    buf_h = refs[-1]
    buf_in = refs[-2]
    o_ref = refs[-3]
    x_ref, feat_ref = refs[0], refs[1]
    w_refs = refs[2:-3]

    K = kernel_size
    L = seq_len
    c_max = buf_in.shape[0]

    # Zero the shared causal-padding columns (tiny (C_max, pad_max) stores).
    if pad_max > 0:
        z = jnp.zeros((c_max, pad_max), jnp.float32)
        buf_in[:, :pad_max] = z
        buf_h[:, :pad_max] = z

    # ---------------- TCN stack: every TemporalBlock, no HBM round trips ----------------
    act = x_ref[...].astype(jnp.float32)                 # (c_in0, L) current block input
    buf_in[:ch_in[0], pad_max:] = act
    idx = 0
    for bi, d in enumerate(dilations):
        c_in, c_out = ch_in[bi], ch_out[bi]
        w1, b1, w2, b2 = w_refs[idx], w_refs[idx + 1], w_refs[idx + 2], w_refs[idx + 3]
        idx += 4
        if has_down[bi]:
            wd, bd = w_refs[idx], w_refs[idx + 1]
            idx += 2

        def conv(buf, c_src, w_ref, b_ref):
            # Causal dilated conv + bias + ReLU.  Tap j is a static window of the padded
            # activation; the accumulator starts from the first tap's matmul (no zeros init).
            acc = None
            for j in range(K):
                s = pad_max - (K - 1 - j) * d
                tap = buf[:c_src, s:s + L]                                   # (c_src, L)
                term = jnp.dot(w_ref[j], tap, preferred_element_type=jnp.float32)
                acc = term if acc is None else acc + term
            return jnp.maximum(acc + b_ref[...], 0.0)                        # (c_out, L)

        h1 = conv(buf_in, c_in, w1, b1)
        buf_h[:c_out, pad_max:] = h1
        h2 = conv(buf_h, c_out, w2, b2)

        if has_down[bi]:
            res = jnp.dot(wd[...], act, preferred_element_type=jnp.float32) + bd[...]
        else:
            res = act
        act = jnp.maximum(h2 + res, 0.0)                                     # (c_out, L)
        buf_in[:c_out, pad_max:] = act                    # becomes next block's input

    # ---------------- fc head epilogue (tabular features + last TCN time step) ----------
    # TODO(synk): the reference nn.Module cats a 3-D TCN output with 2-D features (shape bug
    #             in the source); we use the last time step, matching the prior version.
    tcn_last = buf_in[:ch_out[-1], pad_max + L - 1: pad_max + L]             # (c_last, 1)
    feat = feat_ref[...]                                                     # (F_pre, 1)

    w_pre, w_tcn, b0 = w_refs[idx], w_refs[idx + 1], w_refs[idx + 2]
    idx += 3
    h = (jnp.dot(w_pre[...], feat, preferred_element_type=jnp.float32)
         + jnp.dot(w_tcn[...], tcn_last, preferred_element_type=jnp.float32)
         + b0[...])
    if num_fc > 1:
        h = jnp.maximum(h, 0.0)
    for li in range(1, num_fc):
        w, b = w_refs[idx], w_refs[idx + 1]
        idx += 2
        h = jnp.dot(w[...], h, preferred_element_type=jnp.float32) + b[...]
        if li < num_fc - 1:
            h = jnp.maximum(h, 0.0)
    o_ref[...] = h


def hybrid_tcn_pallas(x_seq, feat_pre, params, kernel_size):
    """x_seq: (B, C_in, L); feat_pre: (B, F_pre) = [embeddings | bn_cont]; -> (B, out_size)."""
    b, c_in0, L = x_seq.shape
    tcn, fc = params["tcn"], params["fc"]
    f_pre = feat_pre.shape[1]
    out_size = fc[-1][-1].shape[0]

    dilations = tuple(2 ** i for i in range(len(tcn)))
    ch_out = tuple(bp["b1"].shape[0] for bp in tcn)
    ch_in = (c_in0,) + ch_out[:-1]
    has_down = tuple("wd" in bp for bp in tcn)
    pad_max = (kernel_size - 1) * max(dilations)
    c_max = max((c_in0,) + ch_out)

    args = [x_seq, feat_pre[:, :, None]]
    in_specs = [
        pl.BlockSpec((None, c_in0, L), lambda i: (i, 0, 0)),
        pl.BlockSpec((None, f_pre, 1), lambda i: (i, 0, 0)),
    ]

    def resident(arr):
        if arr.ndim == 2:
            return pl.BlockSpec(arr.shape, lambda i: (0, 0))
        return pl.BlockSpec(arr.shape, lambda i: (0, 0, 0))

    for bp in tcn:
        for name in ("w1", "b1", "w2", "b2"):
            args.append(bp[name]); in_specs.append(resident(bp[name]))
        if "wd" in bp:
            for name in ("wd", "bd"):
                args.append(bp[name]); in_specs.append(resident(bp[name]))
    for arr in fc[0]:                                    # (w_pre, w_tcn, b)
        args.append(arr); in_specs.append(resident(arr))
    for (w, bias) in fc[1:]:
        args.append(w); in_specs.append(resident(w))
        args.append(bias); in_specs.append(resident(bias))

    kern = functools.partial(
        _fused_hybrid_tcn_kernel,
        kernel_size=kernel_size, dilations=dilations, ch_in=ch_in, ch_out=ch_out,
        has_down=has_down, pad_max=pad_max, seq_len=L, num_fc=len(fc))

    out = pl.pallas_call(
        kern,
        out_shape=jax.ShapeDtypeStruct((b, out_size, 1), jnp.float32),
        grid_spec=pltpu.PrefetchScalarGridSpec(
            num_scalar_prefetch=0,
            grid=(b,),
            in_specs=in_specs,
            out_specs=pl.BlockSpec((None, out_size, 1), lambda i: (i, 0, 0)),
            scratch_shapes=[pltpu.VMEM((c_max, L + pad_max), jnp.float32),
                            pltpu.VMEM((c_max, L + pad_max), jnp.float32)],
        ),
        compiler_params=pltpu.CompilerParams(
            dimension_semantics=("parallel",),
        ),
    )(*args)
    return out[:, :, 0]


# ------------------------------------------------------------------ parameter preparation

def prepare_params(raw):
    """Hoist weight-layout transforms and eval-mode BN folds out of the forward (run once)."""
    prep = {"emb": list(raw["emb"])}

    bc = raw["bn_cont"]
    inv = 1.0 / jnp.sqrt(bc["rv"] + 1e-5)
    prep["bn_cont_scale"] = (bc["g"] * inv)[None, :]
    prep["bn_cont_shift"] = (bc["b"] - bc["rm"] * bc["g"] * inv)[None, :]

    tcn = []
    for bp in raw["tcn"]:
        nb = {
            # PyTorch Conv1d weight (C_out, C_in, K) -> tap-major (K, C_out, C_in)
            "w1": jnp.transpose(bp["conv1_w"], (2, 0, 1)),
            "b1": bp["conv1_b"][:, None],
            "w2": jnp.transpose(bp["conv2_w"], (2, 0, 1)),
            "b2": bp["conv2_b"][:, None],
        }
        if "down_w" in bp:
            nb["wd"] = bp["down_w"][:, :, 0]
            nb["bd"] = bp["down_b"][:, None]
        tcn.append(nb)
    prep["tcn"] = tcn

    c_last = raw["tcn"][-1]["conv2_b"].shape[0]
    fc = []
    for i, lp in enumerate(raw["fc"]):
        w, b = lp["w"], lp["b"]                          # PyTorch layout (n_out, n_in)
        if "bn_g" in lp:                                 # fold eval-mode BatchNorm1d(n_in)
            inv = 1.0 / jnp.sqrt(lp["bn_rv"] + 1e-5)
            scale = lp["bn_g"] * inv
            shift = lp["bn_b"] - lp["bn_rm"] * scale
            b = b + w @ shift
            w = w * scale[None, :]
        if i == 0:
            # Split into [tabular | tcn-last-step] columns so the kernel epilogue never has
            # to concatenate the feature vector.
            fc.append((w[:, :-c_last], w[:, -c_last:], b[:, None]))
        else:
            fc.append((w, b[:, None]))
    prep["fc"] = fc
    return prep


# ------------------------------------------------------------------ model forward

@functools.partial(jax.jit, static_argnames=("kernel_size",))
def hybrid_tcn_forward(params, x_cat, x_cont, x_seq, *, kernel_size):
    # Embedding gathers + eval-mode bn_cont affine stay in XLA glue.
    # TODO(synk): table-lookup gather has no profitable Pallas equivalent at these sizes.
    embs = [params["emb"][i][x_cat[:, i]] for i in range(len(params["emb"]))]
    x_cont_bn = x_cont * params["bn_cont_scale"] + params["bn_cont_shift"]
    feat_pre = jnp.concatenate(embs + [x_cont_bn], axis=1)          # (B, F_pre)
    # Everything else (full TCN stack + fc head) is ONE fused Pallas kernel.
    return hybrid_tcn_pallas(x_seq, feat_pre, params, kernel_size)


# ------------------------------------------------------------------ init + pure-JAX reference

def init_params(key, emb_sizes, n_cont, hidden_sizes, out_size,
                cnn_input_size, num_kernels, kernel_size, cnn_num_blocks,
                cnn_output_size):
    keys = iter(jax.random.split(key, 256))
    params = {}

    # embeddings: weight.normal_().fmod_(2).mul_(0.01) ~= 0.01 * normal
    params["emb"] = [0.01 * jax.random.normal(next(keys), (nc, nd), jnp.float32)
                     for nc, nd in emb_sizes]

    params["bn_cont"] = dict(g=jnp.ones(n_cont), b=jnp.zeros(n_cont),
                             rm=jnp.zeros(n_cont), rv=jnp.ones(n_cont))

    channels = [num_kernels] * cnn_num_blocks + [cnn_output_size]
    tcn = []
    for i, c_out in enumerate(channels):
        c_in = cnn_input_size if i == 0 else channels[i - 1]
        bp = {
            "conv1_w": 0.1 * jax.random.normal(next(keys), (c_out, c_in, kernel_size), jnp.float32),
            "conv1_b": 0.1 * jax.random.normal(next(keys), (c_out,), jnp.float32),
            "conv2_w": 0.1 * jax.random.normal(next(keys), (c_out, c_out, kernel_size), jnp.float32),
            "conv2_b": 0.1 * jax.random.normal(next(keys), (c_out,), jnp.float32),
        }
        if c_in != c_out:
            bp["down_w"] = 0.1 * jax.random.normal(next(keys), (c_out, c_in, 1), jnp.float32)
            bp["down_b"] = 0.1 * jax.random.normal(next(keys), (c_out,), jnp.float32)
        tcn.append(bp)
    params["tcn"] = tcn

    n_emb = sum(nd for _, nd in emb_sizes)
    layer_sizes = [n_emb + n_cont + cnn_output_size] + list(hidden_sizes) + [out_size]
    fc = []
    for i in range(len(layer_sizes) - 1):
        n_in, n_out = layer_sizes[i], layer_sizes[i + 1]
        lp = {
            # kaiming_normal_ (fan_in, a=0) on (n_out, n_in): std = sqrt(2 / n_in)
            "w": jax.random.normal(next(keys), (n_out, n_in), jnp.float32) * jnp.sqrt(2.0 / n_in),
            "b": jax.random.uniform(next(keys), (n_out,), jnp.float32,
                                    -1.0 / jnp.sqrt(n_in), 1.0 / jnp.sqrt(n_in)),
        }
        if i > 0:  # use_bn=True: BN before every Linear except the first
            lp.update(bn_g=jnp.ones(n_in), bn_b=jnp.zeros(n_in),
                      bn_rm=jnp.zeros(n_in), bn_rv=jnp.ones(n_in))
        fc.append(lp)
    params["fc"] = fc
    return params


def _reference_forward(raw, x_cat, x_cont, x_seq):
    """Independent pure-JAX/XLA reference of the same eval-mode forward."""
    embs = [raw["emb"][i][x_cat[:, i]] for i in range(len(raw["emb"]))]
    x = jnp.concatenate(embs, axis=1)
    bc = raw["bn_cont"]
    xc = (x_cont - bc["rm"]) / jnp.sqrt(bc["rv"] + 1e-5) * bc["g"] + bc["b"]
    x = jnp.concatenate([x, xc], axis=1)

    def causal_conv(h, w, b, dilation):
        pad = (w.shape[2] - 1) * dilation
        hp = jnp.pad(h, ((0, 0), (0, 0), (pad, 0)))
        out = jax.lax.conv_general_dilated(
            hp, w, window_strides=(1,), padding="VALID", rhs_dilation=(dilation,),
            dimension_numbers=("NCH", "OIH", "NCH"))
        return out + b[None, :, None]

    h = x_seq
    for i, bp in enumerate(raw["tcn"]):
        d = 2 ** i
        h1 = jax.nn.relu(causal_conv(h, bp["conv1_w"], bp["conv1_b"], d))
        h2 = jax.nn.relu(causal_conv(h1, bp["conv2_w"], bp["conv2_b"], d))
        res = causal_conv(h, bp["down_w"], bp["down_b"], 1) if "down_w" in bp else h
        h = jax.nn.relu(h2 + res)
    x = jnp.concatenate([x, h[:, :, -1]], axis=1)

    for i, lp in enumerate(raw["fc"]):
        if "bn_g" in lp:
            inv = 1.0 / jnp.sqrt(lp["bn_rv"] + 1e-5)
            x = (x - lp["bn_rm"]) * inv * lp["bn_g"] + lp["bn_b"]
        x = x @ lp["w"].T + lp["b"]
        if i < len(raw["fc"]) - 1:
            x = jax.nn.relu(x)
    return x


# ------------------------------------------------------------------ main

if __name__ == "__main__":
    emb_sizes = [(10, 4), (8, 3)]
    n_cont = 5
    hidden_sizes = [32, 16]
    out_size = 1
    cnn_input_size = 1
    num_kernels = 8
    kernel_size = 2
    cnn_num_blocks = 3
    cnn_output_size = 1

    batch, seq_len = 4, 16

    key = jax.random.PRNGKey(0)
    kp, kc, kq, ks = jax.random.split(key, 4)

    raw = init_params(kp, emb_sizes, n_cont, hidden_sizes, out_size,
                      cnn_input_size, num_kernels, kernel_size,
                      cnn_num_blocks, cnn_output_size)
    params = prepare_params(raw)   # hoisted once per parameter set

    x_cat = jnp.stack(
        [jax.random.randint(jax.random.fold_in(kc, i), (batch,), 0, nc)
         for i, (nc, _) in enumerate(emb_sizes)], axis=1)                     # (B, n_cat)
    x_cont = jax.random.normal(kq, (batch, n_cont), jnp.float32)              # (B, n_cont)
    x_seq = jax.random.normal(ks, (batch, cnn_input_size, seq_len), jnp.float32)  # (B, C, L)

    out = hybrid_tcn_forward(params, x_cat, x_cont, x_seq, kernel_size=kernel_size)
    out = jax.block_until_ready(out)
    assert out.shape == (batch, out_size)

    # correctness check against an independent pure-JAX reference of the same forward
    ref = _reference_forward(raw, x_cat, x_cont, x_seq)
    np.testing.assert_allclose(np.asarray(out), np.asarray(ref), rtol=1e-4, atol=1e-4)

    print("KERNEL_OK")
</pallas_src>

<mosaic_0001>
module attributes {stable_mosaic.version = 11 : i64} {
  func.func @_fused_hybrid_tcn_kernel(%arg0: i32, %arg1: memref<1x1x16xf32, #tpu.memory_space<vmem>>, %arg2: memref<1x12x1xf32, #tpu.memory_space<vmem>>, %arg3: memref<2x8x1xf32, #tpu.memory_space<vmem>>, %arg4: memref<8x1xf32, #tpu.memory_space<vmem>>, %arg5: memref<2x8x8xf32, #tpu.memory_space<vmem>>, %arg6: memref<8x1xf32, #tpu.memory_space<vmem>>, %arg7: memref<8x1xf32, #tpu.memory_space<vmem>>, %arg8: memref<8x1xf32, #tpu.memory_space<vmem>>, %arg9: memref<2x8x8xf32, #tpu.memory_space<vmem>>, %arg10: memref<8x1xf32, #tpu.memory_space<vmem>>, %arg11: memref<2x8x8xf32, #tpu.memory_space<vmem>>, %arg12: memref<8x1xf32, #tpu.memory_space<vmem>>, %arg13: memref<2x8x8xf32, #tpu.memory_space<vmem>>, %arg14: memref<8x1xf32, #tpu.memory_space<vmem>>, %arg15: memref<2x8x8xf32, #tpu.memory_space<vmem>>, %arg16: memref<8x1xf32, #tpu.memory_space<vmem>>, %arg17: memref<2x1x8xf32, #tpu.memory_space<vmem>>, %arg18: memref<1x1xf32, #tpu.memory_space<vmem>>, %arg19: memref<2x1x1xf32, #tpu.memory_space<vmem>>, %arg20: memref<1x1xf32, #tpu.memory_space<vmem>>, %arg21: memref<1x8xf32, #tpu.memory_space<vmem>>, %arg22: memref<1x1xf32, #tpu.memory_space<vmem>>, %arg23: memref<32x12xf32, #tpu.memory_space<vmem>>, %arg24: memref<32x1xf32, #tpu.memory_space<vmem>>, %arg25: memref<32x1xf32, #tpu.memory_space<vmem>>, %arg26: memref<16x32xf32, #tpu.memory_space<vmem>>, %arg27: memref<16x1xf32, #tpu.memory_space<vmem>>, %arg28: memref<1x16xf32, #tpu.memory_space<vmem>>, %arg29: memref<1x1xf32, #tpu.memory_space<vmem>>, %arg30: memref<1x1x1xf32, #tpu.memory_space<vmem>>, %arg31: memref<8x24xf32, #tpu.memory_space<vmem>>, %arg32: memref<8x24xf32, #tpu.memory_space<vmem>>) attributes {dimension_semantics = [#tpu.dimension_semantics<parallel>], iteration_bounds = array<i64: 4>, scalar_prefetch = 0 : i64, scratch_operands = 2 : i64, tpu.core_type = #tpu.core_type<tc>, window_params = [{transform_indices = @transform_0, window_bounds = array<i64: 1, 1, 16>}, {transform_indices = @transform_1, window_bounds = array<i64: 1, 12, 1>}, {pipeline_mode = #tpu.pipeline_mode<synchronous>, transform_indices = @transform_2, window_bounds = array<i64: 2, 8, 1>}, {pipeline_mode = #tpu.pipeline_mode<synchronous>, transform_indices = @transform_3, window_bounds = array<i64: 8, 1>}, {pipeline_mode = #tpu.pipeline_mode<synchronous>, transform_indices = @transform_4, window_bounds = array<i64: 2, 8, 8>}, {pipeline_mode = #tpu.pipeline_mode<synchronous>, transform_indices = @transform_5, window_bounds = array<i64: 8, 1>}, {pipeline_mode = #tpu.pipeline_mode<synchronous>, transform_indices = @transform_6, window_bounds = array<i64: 8, 1>}, {pipeline_mode = #tpu.pipeline_mode<synchronous>, transform_indices = @transform_7, window_bounds = array<i64: 8, 1>}, {pipeline_mode = #tpu.pipeline_mode<synchronous>, transform_indices = @transform_8, window_bounds = array<i64: 2, 8, 8>}, {pipeline_mode = #tpu.pipeline_mode<synchronous>, transform_indices = @transform_9, window_bounds = array<i64: 8, 1>}, {pipeline_mode = #tpu.pipeline_mode<synchronous>, transform_indices = @transform_10, window_bounds = array<i64: 2, 8, 8>}, {pipeline_mode = #tpu.pipeline_mode<synchronous>, transform_indices = @transform_11, window_bounds = array<i64: 8, 1>}, {pipeline_mode = #tpu.pipeline_mode<synchronous>, transform_indices = @transform_12, window_bounds = array<i64: 2, 8, 8>}, {pipeline_mode = #tpu.pipeline_mode<synchronous>, transform_indices = @transform_13, window_bounds = array<i64: 8, 1>}, {pipeline_mode = #tpu.pipeline_mode<synchronous>, transform_indices = @transform_14, window_bounds = array<i64: 2, 8, 8>}, {pipeline_mode = #tpu.pipeline_mode<synchronous>, transform_indices = @transform_15, window_bounds = array<i64: 8, 1>}, {pipeline_mode = #tpu.pipeline_mode<synchronous>, transform_indices = @transform_16, window_bounds = array<i64: 2, 1, 8>}, {pipeline_mode = #tpu.pipeline_mode<synchronous>, transform_indices = @transform_17, window_bounds = array<i64: 1, 1>}, {pipeline_mode = #tpu.pipeline_mode<synchronous>, transform_indices = @transform_18, window_bounds = array<i64: 2, 1, 1>}, {pipeline_mode = #tpu.pipeline_mode<synchronous>, transform_indices = @transform_19, window_bounds = array<i64: 1, 1>}, {pipeline_mode = #tpu.pipeline_mode<synchronous>, transform_indices = @transform_20, window_bounds = array<i64: 1, 8>}, {pipeline_mode = #tpu.pipeline_mode<synchronous>, transform_indices = @transform_21, window_bounds = array<i64: 1, 1>}, {pipeline_mode = #tpu.pipeline_mode<synchronous>, transform_indices = @transform_22, window_bounds = array<i64: 32, 12>}, {pipeline_mode = #tpu.pipeline_mode<synchronous>, transform_indices = @transform_23, window_bounds = array<i64: 32, 1>}, {pipeline_mode = #tpu.pipeline_mode<synchronous>, transform_indices = @transform_24, window_bounds = array<i64: 32, 1>}, {pipeline_mode = #tpu.pipeline_mode<synchronous>, transform_indices = @transform_25, window_bounds = array<i64: 16, 32>}, {pipeline_mode = #tpu.pipeline_mode<synchronous>, transform_indices = @transform_26, window_bounds = array<i64: 16, 1>}, {pipeline_mode = #tpu.pipeline_mode<synchronous>, transform_indices = @transform_27, window_bounds = array<i64: 1, 16>}, {pipeline_mode = #tpu.pipeline_mode<synchronous>, transform_indices = @transform_28, window_bounds = array<i64: 1, 1>}, {transform_indices = @transform_29, window_bounds = array<i64: 1, 1, 1>}]} {
    %cst = arith.constant 0.000000e+00 : f32
    %0 = vector.broadcast %cst : f32 to vector<8x8xf32>
    %c0 = arith.constant 0 : index
    %c0_0 = arith.constant 0 : index
    %1 = vector.load %arg31[%c0, %c0_0] : memref<8x24xf32, #tpu.memory_space<vmem>>, vector<8x8xf32>
    tpu.vector_store %arg31[%c0, %c0_0], %0 {strides = array<i32>} : memref<8x24xf32, #tpu.memory_space<vmem>>, vector<8x8xf32>,
    %c0_1 = arith.constant 0 : index
    %c0_2 = arith.constant 0 : index
    %2 = vector.load %arg32[%c0_1, %c0_2] : memref<8x24xf32, #tpu.memory_space<vmem>>, vector<8x8xf32>
    tpu.vector_store %arg32[%c0_1, %c0_2], %0 {strides = array<i32>} : memref<8x24xf32, #tpu.memory_space<vmem>>, vector<8x8xf32>,
    %c0_3 = arith.constant 0 : index
    %c0_4 = arith.constant 0 : index
    %c0_5 = arith.constant 0 : index
    %3 = vector.load %arg1[%c0_3, %c0_4, %c0_5] : memref<1x1x16xf32, #tpu.memory_space<vmem>>, vector<1x1x16xf32>
    %4 = vector.shape_cast %3 : vector<1x1x16xf32> to vector<1x16xf32>
    %c0_6 = arith.constant 0 : index
    %c8 = arith.constant 8 : index
    %5 = vector.load %arg31[%c0_6, %c8] : memref<8x24xf32, #tpu.memory_space<vmem>>, vector<1x16xf32>
    tpu.vector_store %arg31[%c0_6, %c8], %4 {strides = array<i32>} : memref<8x24xf32, #tpu.memory_space<vmem>>, vector<1x16xf32>,
    %c0_7 = arith.constant 0 : index
    %c7 = arith.constant 7 : index
    %6 = vector.load %arg31[%c0_7, %c7] : memref<8x24xf32, #tpu.memory_space<vmem>>, vector<1x16xf32>
    %c0_8 = arith.constant 0 : index
    %c0_9 = arith.constant 0 : index
    %c0_10 = arith.constant 0 : index
    %7 = vector.load %arg3[%c0_8, %c0_9, %c0_10] : memref<2x8x1xf32, #tpu.memory_space<vmem>>, vector<1x8x1xf32>
    %8 = vector.shape_cast %7 : vector<1x8x1xf32> to vector<8x1xf32>
    %cst_11 = arith.constant dense<0.000000e+00> : vector<8x16xf32>
    %9 = tpu.matmul %8, %6, %cst_11 {dimension_numbers = #tpu.dot_dimension_numbers<[1], [0], [0], [1], [0, 0, 1, 1], [], []>} : vector<8x1xf32>, vector<1x16xf32>, vector<8x16xf32> -> vector<8x16xf32>
    %c0_12 = arith.constant 0 : index
    %c8_13 = arith.constant 8 : index
    %10 = vector.load %arg31[%c0_12, %c8_13] : memref<8x24xf32, #tpu.memory_space<vmem>>, vector<1x16xf32>
    %c1 = arith.constant 1 : index
    %c0_14 = arith.constant 0 : index
    %c0_15 = arith.constant 0 : index
    %11 = vector.load %arg3[%c1, %c0_14, %c0_15] : memref<2x8x1xf32, #tpu.memory_space<vmem>>, vector<1x8x1xf32>
    %12 = vector.shape_cast %11 : vector<1x8x1xf32> to vector<8x1xf32>
    %cst_16 = arith.constant dense<0.000000e+00> : vector<8x16xf32>
    %13 = tpu.matmul %12, %10, %cst_16 {dimension_numbers = #tpu.dot_dimension_numbers<[1], [0], [0], [1], [0, 0, 1, 1], [], []>} : vector<8x1xf32>, vector<1x16xf32>, vector<8x16xf32> -> vector<8x16xf32>
    %14 = arith.addf %9, %13 : vector<8x16xf32>
    %c0_17 = arith.constant 0 : index
    %c0_18 = arith.constant 0 : index
    %15 = vector.load %arg4[%c0_17, %c0_18] : memref<8x1xf32, #tpu.memory_space<vmem>>, vector<8x1xf32>
    %16 = vector.broadcast %15 : vector<8x1xf32> to vector<8x16xf32>
    %17 = arith.addf %14, %16 : vector<8x16xf32>
    %cst_19 = arith.constant 0.000000e+00 : f32
    %18 = vector.broadcast %cst_19 : f32 to vector<8x16xf32>
    %19 = arith.maximumf %17, %18 : vector<8x16xf32>
    %c0_20 = arith.constant 0 : index
    %c8_21 = arith.constant 8 : index
    %20 = vector.load %arg32[%c0_20, %c8_21] : memref<8x24xf32, #tpu.memory_space<vmem>>, vector<8x16xf32>
    tpu.vector_store %arg32[%c0_20, %c8_21], %19 {strides = array<i32>} : memref<8x24xf32, #tpu.memory_space<vmem>>, vector<8x16xf32>,
    %c0_22 = arith.constant 0 : index
    %c7_23 = arith.constant 7 : index
    %21 = vector.load %arg32[%c0_22, %c7_23] : memref<8x24xf32, #tpu.memory_space<vmem>>, vector<8x16xf32>
    %c0_24 = arith.constant 0 : index
    %c0_25 = arith.constant 0 : index
    %c0_26 = arith.constant 0 : index
    %22 = vector.load %arg5[%c0_24, %c0_25, %c0_26] : memref<2x8x8xf32, #tpu.memory_space<vmem>>, vector<1x8x8xf32>
    %23 = vector.shape_cast %22 : vector<1x8x8xf32> to vector<8x8xf32>
    %cst_27 = arith.constant dense<0.000000e+00> : vector<8x16xf32>
    %24 = tpu.matmul %23, %21, %cst_27 {dimension_numbers = #tpu.dot_dimension_numbers<[1], [0], [0], [1], [0, 0, 1, 1], [], []>} : vector<8x8xf32>, vector<8x16xf32>, vector<8x16xf32> -> vector<8x16xf32>
    %c0_28 = arith.constant 0 : index
    %c8_29 = arith.constant 8 : index
    %25 = vector.load %arg32[%c0_28, %c8_29] : memref<8x24xf32, #tpu.memory_space<vmem>>, vector<8x16xf32>
    %c1_30 = arith.constant 1 : index
    %c0_31 = arith.constant 0 : index
    %c0_32 = arith.constant 0 : index
    %26 = vector.load %arg5[%c1_30, %c0_31, %c0_32] : memref<2x8x8xf32, #tpu.memory_space<vmem>>, vector<1x8x8xf32>
    %27 = vector.shape_cast %26 : vector<1x8x8xf32> to vector<8x8xf32>
    %cst_33 = arith.constant dense<0.000000e+00> : vector<8x16xf32>
    %28 = tpu.matmul %27, %25, %cst_33 {dimension_numbers = #tpu.dot_dimension_numbers<[1], [0], [0], [1], [0, 0, 1, 1], [], []>} : vector<8x8xf32>, vector<8x16xf32>, vector<8x16xf32> -> vector<8x16xf32>
    %29 = arith.addf %24, %28 : vector<8x16xf32>
    %c0_34 = arith.constant 0 : index
    %c0_35 = arith.constant 0 : index
    %30 = vector.load %arg6[%c0_34, %c0_35] : memref<8x1xf32, #tpu.memory_space<vmem>>, vector<8x1xf32>
    %31 = vector.broadcast %30 : vector<8x1xf32> to vector<8x16xf32>
    %32 = arith.addf %29, %31 : vector<8x16xf32>
    %cst_36 = arith.constant 0.000000e+00 : f32
    %33 = vector.broadcast %cst_36 : f32 to vector<8x16xf32>
    %34 = arith.maximumf %32, %33 : vector<8x16xf32>
    %c0_37 = arith.constant 0 : index
    %c0_38 = arith.constant 0 : index
    %35 = vector.load %arg7[%c0_37, %c0_38] : memref<8x1xf32, #tpu.memory_space<vmem>>, vector<8x1xf32>
    %cst_39 = arith.constant dense<0.000000e+00> : vector<8x16xf32>
    %36 = tpu.matmul %35, %4, %cst_39 {dimension_numbers = #tpu.dot_dimension_numbers<[1], [0], [0], [1], [0, 0, 1, 1], [], []>} : vector<8x1xf32>, vector<1x16xf32>, vector<8x16xf32> -> vector<8x16xf32>
    %c0_40 = arith.constant 0 : index
    %c0_41 = arith.constant 0 : index
    %37 = vector.load %arg8[%c0_40, %c0_41] : memref<8x1xf32, #tpu.memory_space<vmem>>, vector<8x1xf32>
    %38 = vector.broadcast %37 : vector<8x1xf32> to vector<8x16xf32>
    %39 = arith.addf %36, %38 : vector<8x16xf32>
    %40 = arith.addf %34, %39 : vector<8x16xf32>
    %cst_42 = arith.constant 0.000000e+00 : f32
    %41 = vector.broadcast %cst_42 : f32 to vector<8x16xf32>
    %42 = arith.maximumf %40, %41 : vector<8x16xf32>
    %c0_43 = arith.constant 0 : index
    %c8_44 = arith.constant 8 : index
    %43 = vector.load %arg31[%c0_43, %c8_44] : memref<8x24xf32, #tpu.memory_space<vmem>>, vector<8x16xf32>
    tpu.vector_store %arg31[%c0_43, %c8_44], %42 {strides = array<i32>} : memref<8x24xf32, #tpu.memory_space<vmem>>, vector<8x16xf32>,
    %c0_45 = arith.constant 0 : index
    %c6 = arith.constant 6 : index
    %44 = vector.load %arg31[%c0_45, %c6] : memref<8x24xf32, #tpu.memory_space<vmem>>, vector<8x16xf32>
    %c0_46 = arith.constant 0 : index
    %c0_47 = arith.constant 0 : index
    %c0_48 = arith.constant 0 : index
    %45 = vector.load %arg9[%c0_46, %c0_47, %c0_48] : memref<2x8x8xf32, #tpu.memory_space<vmem>>, vector<1x8x8xf32>
    %46 = vector.shape_cast %45 : vector<1x8x8xf32> to vector<8x8xf32>
    %cst_49 = arith.constant dense<0.000000e+00> : vector<8x16xf32>
    %47 = tpu.matmul %46, %44, %cst_49 {dimension_numbers = #tpu.dot_dimension_numbers<[1], [0], [0], [1], [0, 0, 1, 1], [], []>} : vector<8x8xf32>, vector<8x16xf32>, vector<8x16xf32> -> vector<8x16xf32>
    %c0_50 = arith.constant 0 : index
    %c8_51 = arith.constant 8 : index
    %48 = vector.load %arg31[%c0_50, %c8_51] : memref<8x24xf32, #tpu.memory_space<vmem>>, vector<8x16xf32>
    %c1_52 = arith.constant 1 : index
    %c0_53 = arith.constant 0 : index
    %c0_54 = arith.constant 0 : index
    %49 = vector.load %arg9[%c1_52, %c0_53, %c0_54] : memref<2x8x8xf32, #tpu.memory_space<vmem>>, vector<1x8x8xf32>
    %50 = vector.shape_cast %49 : vector<1x8x8xf32> to vector<8x8xf32>
    %cst_55 = arith.constant dense<0.000000e+00> : vector<8x16xf32>
    %51 = tpu.matmul %50, %48, %cst_55 {dimension_numbers = #tpu.dot_dimension_numbers<[1], [0], [0], [1], [0, 0, 1, 1], [], []>} : vector<8x8xf32>, vector<8x16xf32>, vector<8x16xf32> -> vector<8x16xf32>
    %52 = arith.addf %47, %51 : vector<8x16xf32>
    %c0_56 = arith.constant 0 : index
    %c0_57 = arith.constant 0 : index
    %53 = vector.load %arg10[%c0_56, %c0_57] : memref<8x1xf32, #tpu.memory_space<vmem>>, vector<8x1xf32>
    %54 = vector.broadcast %53 : vector<8x1xf32> to vector<8x16xf32>
    %55 = arith.addf %52, %54 : vector<8x16xf32>
    %cst_58 = arith.constant 0.000000e+00 : f32
    %56 = vector.broadcast %cst_58 : f32 to vector<8x16xf32>
    %57 = arith.maximumf %55, %56 : vector<8x16xf32>
    %c0_59 = arith.constant 0 : index
    %c8_60 = arith.constant 8 : index
    %58 = vector.load %arg32[%c0_59, %c8_60] : memref<8x24xf32, #tpu.memory_space<vmem>>, vector<8x16xf32>
    tpu.vector_store %arg32[%c0_59, %c8_60], %57 {strides = array<i32>} : memref<8x24xf32, #tpu.memory_space<vmem>>, vector<8x16xf32>,
    %c0_61 = arith.constant 0 : index
    %c6_62 = arith.constant 6 : index
    %59 = vector.load %arg32[%c0_61, %c6_62] : memref<8x24xf32, #tpu.memory_space<vmem>>, vector<8x16xf32>
    %c0_63 = arith.constant 0 : index
    %c0_64 = arith.constant 0 : index
    %c0_65 = arith.constant 0 : index
    %60 = vector.load %arg11[%c0_63, %c0_64, %c0_65] : memref<2x8x8xf32, #tpu.memory_space<vmem>>, vector<1x8x8xf32>
    %61 = vector.shape_cast %60 : vector<1x8x8xf32> to vector<8x8xf32>
    %cst_66 = arith.constant dense<0.000000e+00> : vector<8x16xf32>
    %62 = tpu.matmul %61, %59, %cst_66 {dimension_numbers = #tpu.dot_dimension_numbers<[1], [0], [0], [1], [0, 0, 1, 1], [], []>} : vector<8x8xf32>, vector<8x16xf32>, vector<8x16xf32> -> vector<8x16xf32>
    %c0_67 = arith.constant 0 : index
    %c8_68 = arith.constant 8 : index
    %63 = vector.load %arg32[%c0_67, %c8_68] : memref<8x24xf32, #tpu.memory_space<vmem>>, vector<8x16xf32>
    %c1_69 = arith.constant 1 : index
    %c0_70 = arith.constant 0 : index
    %c0_71 = arith.constant 0 : index
    %64 = vector.load %arg11[%c1_69, %c0_70, %c0_71] : memref<2x8x8xf32, #tpu.memory_space<vmem>>, vector<1x8x8xf32>
    %65 = vector.shape_cast %64 : vector<1x8x8xf32> to vector<8x8xf32>
    %cst_72 = arith.constant dense<0.000000e+00> : vector<8x16xf32>
    %66 = tpu.matmul %65, %63, %cst_72 {dimension_numbers = #tpu.dot_dimension_numbers<[1], [0], [0], [1], [0, 0, 1, 1], [], []>} : vector<8x8xf32>, vector<8x16xf32>, vector<8x16xf32> -> vector<8x16xf32>
    %67 = arith.addf %62, %66 : vector<8x16xf32>
    %c0_73 = arith.constant 0 : index
    %c0_74 = arith.constant 0 : index
    %68 = vector.load %arg12[%c0_73, %c0_74] : memref<8x1xf32, #tpu.memory_space<vmem>>, vector<8x1xf32>
    %69 = vector.broadcast %68 : vector<8x1xf32> to vector<8x16xf32>
    %70 = arith.addf %67, %69 : vector<8x16xf32>
    %cst_75 = arith.constant 0.000000e+00 : f32
    %71 = vector.broadcast %cst_75 : f32 to vector<8x16xf32>
    %72 = arith.maximumf %70, %71 : vector<8x16xf32>
    %73 = arith.addf %72, %42 : vector<8x16xf32>
    %cst_76 = arith.constant 0.000000e+00 : f32
    %74 = vector.broadcast %cst_76 : f32 to vector<8x16xf32>
    %75 = arith.maximumf %73, %74 : vector<8x16xf32>
    %c0_77 = arith.constant 0 : index
    %c8_78 = arith.constant 8 : index
    %76 = vector.load %arg31[%c0_77, %c8_78] : memref<8x24xf32, #tpu.memory_space<vmem>>, vector<8x16xf32>
    tpu.vector_store %arg31[%c0_77, %c8_78], %75 {strides = array<i32>} : memref<8x24xf32, #tpu.memory_space<vmem>>, vector<8x16xf32>,
    %c0_79 = arith.constant 0 : index
    %c4 = arith.constant 4 : index
    %77 = vector.load %arg31[%c0_79, %c4] : memref<8x24xf32, #tpu.memory_space<vmem>>, vector<8x16xf32>
    %c0_80 = arith.constant 0 : index
    %c0_81 = arith.constant 0 : index
    %c0_82 = arith.constant 0 : index
    %78 = vector.load %arg13[%c0_80, %c0_81, %c0_82] : memref<2x8x8xf32, #tpu.memory_space<vmem>>, vector<1x8x8xf32>
    %79 = vector.shape_cast %78 : vector<1x8x8xf32> to vector<8x8xf32>
    %cst_83 = arith.constant dense<0.000000e+00> : vector<8x16xf32>
    %80 = tpu.matmul %79, %77, %cst_83 {dimension_numbers = #tpu.dot_dimension_numbers<[1], [0], [0], [1], [0, 0, 1, 1], [], []>} : vector<8x8xf32>, vector<8x16xf32>, vector<8x16xf32> -> vector<8x16xf32>
    %c0_84 = arith.constant 0 : index
    %c8_85 = arith.constant 8 : index
    %81 = vector.load %arg31[%c0_84, %c8_85] : memref<8x24xf32, #tpu.memory_space<vmem>>, vector<8x16xf32>
    %c1_86 = arith.constant 1 : index
    %c0_87 = arith.constant 0 : index
    %c0_88 = arith.constant 0 : index
    %82 = vector.load %arg13[%c1_86, %c0_87, %c0_88] : memref<2x8x8xf32, #tpu.memory_space<vmem>>, vector<1x8x8xf32>
    %83 = vector.shape_cast %82 : vector<1x8x8xf32> to vector<8x8xf32>
    %cst_89 = arith.constant dense<0.000000e+00> : vector<8x16xf32>
    %84 = tpu.matmul %83, %81, %cst_89 {dimension_numbers = #tpu.dot_dimension_numbers<[1], [0], [0], [1], [0, 0, 1, 1], [], []>} : vector<8x8xf32>, vector<8x16xf32>, vector<8x16xf32> -> vector<8x16xf32>
    %85 = arith.addf %80, %84 : vector<8x16xf32>
    %c0_90 = arith.constant 0 : index
    %c0_91 = arith.constant 0 : index
    %86 = vector.load %arg14[%c0_90, %c0_91] : memref<8x1xf32, #tpu.memory_space<vmem>>, vector<8x1xf32>
    %87 = vector.broadcast %86 : vector<8x1xf32> to vector<8x16xf32>
    %88 = arith.addf %85, %87 : vector<8x16xf32>
    %cst_92 = arith.constant 0.000000e+00 : f32
    %89 = vector.broadcast %cst_92 : f32 to vector<8x16xf32>
    %90 = arith.maximumf %88, %89 : vector<8x16xf32>
    %c0_93 = arith.constant 0 : index
    %c8_94 = arith.constant 8 : index
    %91 = vector.load %arg32[%c0_93, %c8_94] : memref<8x24xf32, #tpu.memory_space<vmem>>, vector<8x16xf32>
    tpu.vector_store %arg32[%c0_93, %c8_94], %90 {strides = array<i32>} : memref<8x24xf32, #tpu.memory_space<vmem>>, vector<8x16xf32>,
    %c0_95 = arith.constant 0 : index
    %c4_96 = arith.constant 4 : index
    %92 = vector.load %arg32[%c0_95, %c4_96] : memref<8x24xf32, #tpu.memory_space<vmem>>, vector<8x16xf32>
    %c0_97 = arith.constant 0 : index
    %c0_98 = arith.constant 0 : index
    %c0_99 = arith.constant 0 : index
    %93 = vector.load %arg15[%c0_97, %c0_98, %c0_99] : memref<2x8x8xf32, #tpu.memory_space<vmem>>, vector<1x8x8xf32>
    %94 = vector.shape_cast %93 : vector<1x8x8xf32> to vector<8x8xf32>
    %cst_100 = arith.constant dense<0.000000e+00> : vector<8x16xf32>
    %95 = tpu.matmul %94, %92, %cst_100 {dimension_numbers = #tpu.dot_dimension_numbers<[1], [0], [0], [1], [0, 0, 1, 1], [], []>} : vector<8x8xf32>, vector<8x16xf32>, vector<8x16xf32> -> vector<8x16xf32>
    %c0_101 = arith.constant 0 : index
    %c8_102 = arith.constant 8 : index
    %96 = vector.load %arg32[%c0_101, %c8_102] : memref<8x24xf32, #tpu.memory_space<vmem>>, vector<8x16xf32>
    %c1_103 = arith.constant 1 : index
    %c0_104 = arith.constant 0 : index
    %c0_105 = arith.constant 0 : index
    %97 = vector.load %arg15[%c1_103, %c0_104, %c0_105] : memref<2x8x8xf32, #tpu.memory_space<vmem>>, vector<1x8x8xf32>
    %98 = vector.shape_cast %97 : vector<1x8x8xf32> to vector<8x8xf32>
    %cst_106 = arith.constant dense<0.000000e+00> : vector<8x16xf32>
    %99 = tpu.matmul %98, %96, %cst_106 {dimension_numbers = #tpu.dot_dimension_numbers<[1], [0], [0], [1], [0, 0, 1, 1], [], []>} : vector<8x8xf32>, vector<8x16xf32>, vector<8x16xf32> -> vector<8x16xf32>
    %100 = arith.addf %95, %99 : vector<8x16xf32>
    %c0_107 = arith.constant 0 : index
    %c0_108 = arith.constant 0 : index
    %101 = vector.load %arg16[%c0_107, %c0_108] : memref<8x1xf32, #tpu.memory_space<vmem>>, vector<8x1xf32>
    %102 = vector.broadcast %101 : vector<8x1xf32> to vector<8x16xf32>
    %103 = arith.addf %100, %102 : vector<8x16xf32>
    %cst_109 = arith.constant 0.000000e+00 : f32
    %104 = vector.broadcast %cst_109 : f32 to vector<8x16xf32>
    %105 = arith.maximumf %103, %104 : vector<8x16xf32>
    %106 = arith.addf %105, %75 : vector<8x16xf32>
    %cst_110 = arith.constant 0.000000e+00 : f32
    %107 = vector.broadcast %cst_110 : f32 to vector<8x16xf32>
    %108 = arith.maximumf %106, %107 : vector<8x16xf32>
    %c0_111 = arith.constant 0 : index
    %c8_112 = arith.constant 8 : index
    %109 = vector.load %arg31[%c0_111, %c8_112] : memref<8x24xf32, #tpu.memory_space<vmem>>, vector<8x16xf32>
    tpu.vector_store %arg31[%c0_111, %c8_112], %108 {strides = array<i32>} : memref<8x24xf32, #tpu.memory_space<vmem>>, vector<8x16xf32>,
    %c0_113 = arith.constant 0 : index
    %c0_114 = arith.constant 0 : index
    %110 = vector.load %arg31[%c0_113, %c0_114] : memref<8x24xf32, #tpu.memory_space<vmem>>, vector<8x16xf32>
    %c0_115 = arith.constant 0 : index
    %c0_116 = arith.constant 0 : index
    %c0_117 = arith.constant 0 : index
    %111 = vector.load %arg17[%c0_115, %c0_116, %c0_117] : memref<2x1x8xf32, #tpu.memory_space<vmem>>, vector<1x1x8xf32>
    %112 = vector.shape_cast %111 : vector<1x1x8xf32> to vector<1x8xf32>
    %cst_118 = arith.constant dense<0.000000e+00> : vector<1x16xf32>
    %113 = tpu.matmul %112, %110, %cst_118 {dimension_numbers = #tpu.dot_dimension_numbers<[1], [0], [0], [1], [0, 0, 1, 1], [], []>} : vector<1x8xf32>, vector<8x16xf32>, vector<1x16xf32> -> vector<1x16xf32>
    %c0_119 = arith.constant 0 : index
    %c8_120 = arith.constant 8 : index
    %114 = vector.load %arg31[%c0_119, %c8_120] : memref<8x24xf32, #tpu.memory_space<vmem>>, vector<8x16xf32>
    %c1_121 = arith.constant 1 : index
    %c0_122 = arith.constant 0 : index
    %c0_123 = arith.constant 0 : index
    %115 = vector.load %arg17[%c1_121, %c0_122, %c0_123] : memref<2x1x8xf32, #tpu.memory_space<vmem>>, vector<1x1x8xf32>
    %116 = vector.shape_cast %115 : vector<1x1x8xf32> to vector<1x8xf32>
    %cst_124 = arith.constant dense<0.000000e+00> : vector<1x16xf32>
    %117 = tpu.matmul %116, %114, %cst_124 {dimension_numbers = #tpu.dot_dimension_numbers<[1], [0], [0], [1], [0, 0, 1, 1], [], []>} : vector<1x8xf32>, vector<8x16xf32>, vector<1x16xf32> -> vector<1x16xf32>
    %118 = arith.addf %113, %117 : vector<1x16xf32>
    %c0_125 = arith.constant 0 : index
    %c0_126 = arith.constant 0 : index
    %119 = vector.load %arg18[%c0_125, %c0_126] : memref<1x1xf32, #tpu.memory_space<vmem>>, vector<1x1xf32>
    %120 = vector.broadcast %119 : vector<1x1xf32> to vector<1x16xf32>
    %121 = arith.addf %118, %120 : vector<1x16xf32>
    %cst_127 = arith.constant 0.000000e+00 : f32
    %122 = vector.broadcast %cst_127 : f32 to vector<1x16xf32>
    %123 = arith.maximumf %121, %122 : vector<1x16xf32>
    %c0_128 = arith.constant 0 : index
    %c8_129 = arith.constant 8 : index
    %124 = vector.load %arg32[%c0_128, %c8_129] : memref<8x24xf32, #tpu.memory_space<vmem>>, vector<1x16xf32>
    tpu.vector_store %arg32[%c0_128, %c8_129], %123 {strides = array<i32>} : memref<8x24xf32, #tpu.memory_space<vmem>>, vector<1x16xf32>,
    %c0_130 = arith.constant 0 : index
    %c0_131 = arith.constant 0 : index
    %125 = vector.load %arg32[%c0_130, %c0_131] : memref<8x24xf32, #tpu.memory_space<vmem>>, vector<1x16xf32>
    %c0_132 = arith.constant 0 : index
    %c0_133 = arith.constant 0 : index
    %c0_134 = arith.constant 0 : index
    %126 = vector.load %arg19[%c0_132, %c0_133, %c0_134] : memref<2x1x1xf32, #tpu.memory_space<vmem>>, vector<1x1x1xf32>
    %127 = vector.shape_cast %126 : vector<1x1x1xf32> to vector<1x1xf32>
    %cst_135 = arith.constant dense<0.000000e+00> : vector<1x16xf32>
    %128 = tpu.matmul %127, %125, %cst_135 {dimension_numbers = #tpu.dot_dimension_numbers<[1], [0], [0], [1], [0, 0, 1, 1], [], []>} : vector<1x1xf32>, vector<1x16xf32>, vector<1x16xf32> -> vector<1x16xf32>
    %c0_136 = arith.constant 0 : index
    %c8_137 = arith.constant 8 : index
    %129 = vector.load %arg32[%c0_136, %c8_137] : memref<8x24xf32, #tpu.memory_space<vmem>>, vector<1x16xf32>
    %c1_138 = arith.constant 1 : index
    %c0_139 = arith.constant 0 : index
    %c0_140 = arith.constant 0 : index
    %130 = vector.load %arg19[%c1_138, %c0_139, %c0_140] : memref<2x1x1xf32, #tpu.memory_space<vmem>>, vector<1x1x1xf32>
    %131 = vector.shape_cast %130 : vector<1x1x1xf32> to vector<1x1xf32>
    %cst_141 = arith.constant dense<0.000000e+00> : vector<1x16xf32>
    %132 = tpu.matmul %131, %129, %cst_141 {dimension_numbers = #tpu.dot_dimension_numbers<[1], [0], [0], [1], [0, 0, 1, 1], [], []>} : vector<1x1xf32>, vector<1x16xf32>, vector<1x16xf32> -> vector<1x16xf32>
    %133 = arith.addf %128, %132 : vector<1x16xf32>
    %c0_142 = arith.constant 0 : index
    %c0_143 = arith.constant 0 : index
    %134 = vector.load %arg20[%c0_142, %c0_143] : memref<1x1xf32, #tpu.memory_space<vmem>>, vector<1x1xf32>
    %135 = vector.broadcast %134 : vector<1x1xf32> to vector<1x16xf32>
    %136 = arith.addf %133, %135 : vector<1x16xf32>
    %cst_144 = arith.constant 0.000000e+00 : f32
    %137 = vector.broadcast %cst_144 : f32 to vector<1x16xf32>
    %138 = arith.maximumf %136, %137 : vector<1x16xf32>
    %c0_145 = arith.constant 0 : index
    %c0_146 = arith.constant 0 : index
    %139 = vector.load %arg21[%c0_145, %c0_146] : memref<1x8xf32, #tpu.memory_space<vmem>>, vector<1x8xf32>
    %cst_147 = arith.constant dense<0.000000e+00> : vector<1x16xf32>
    %140 = tpu.matmul %139, %108, %cst_147 {dimension_numbers = #tpu.dot_dimension_numbers<[1], [0], [0], [1], [0, 0, 1, 1], [], []>} : vector<1x8xf32>, vector<8x16xf32>, vector<1x16xf32> -> vector<1x16xf32>
    %c0_148 = arith.constant 0 : index
    %c0_149 = arith.constant 0 : index
    %141 = vector.load %arg22[%c0_148, %c0_149] : memref<1x1xf32, #tpu.memory_space<vmem>>, vector<1x1xf32>
    %142 = vector.broadcast %141 : vector<1x1xf32> to vector<1x16xf32>
    %143 = arith.addf %140, %142 : vector<1x16xf32>
    %144 = arith.addf %138, %143 : vector<1x16xf32>
    %cst_150 = arith.constant 0.000000e+00 : f32
    %145 = vector.broadcast %cst_150 : f32 to vector<1x16xf32>
    %146 = arith.maximumf %144, %145 : vector<1x16xf32>
    %c0_151 = arith.constant 0 : index
    %c8_152 = arith.constant 8 : index
    %147 = vector.load %arg31[%c0_151, %c8_152] : memref<8x24xf32, #tpu.memory_space<vmem>>, vector<1x16xf32>
    tpu.vector_store %arg31[%c0_151, %c8_152], %146 {strides = array<i32>} : memref<8x24xf32, #tpu.memory_space<vmem>>, vector<1x16xf32>,
    %c0_153 = arith.constant 0 : index
    %c23 = arith.constant 23 : index
    %148 = vector.load %arg31[%c0_153, %c23] : memref<8x24xf32, #tpu.memory_space<vmem>>, vector<1x1xf32>
    %c0_154 = arith.constant 0 : index
    %c0_155 = arith.constant 0 : index
    %c0_156 = arith.constant 0 : index
    %149 = vector.load %arg2[%c0_154, %c0_155, %c0_156] : memref<1x12x1xf32, #tpu.memory_space<vmem>>, vector<1x12x1xf32>
    %150 = vector.shape_cast %149 : vector<1x12x1xf32> to vector<12x1xf32>
    %c0_157 = arith.constant 0 : index
    %c0_158 = arith.constant 0 : index
    %151 = vector.load %arg23[%c0_157, %c0_158] : memref<32x12xf32, #tpu.memory_space<vmem>>, vector<32x12xf32>
    %cst_159 = arith.constant dense<0.000000e+00> : vector<32x1xf32>
    %152 = tpu.matmul %151, %150, %cst_159 {dimension_numbers = #tpu.dot_dimension_numbers<[1], [0], [0], [1], [0, 0, 1, 1], [], []>} : vector<32x12xf32>, vector<12x1xf32>, vector<32x1xf32> -> vector<32x1xf32>
    %c0_160 = arith.constant 0 : index
    %c0_161 = arith.constant 0 : index
    %153 = vector.load %arg24[%c0_160, %c0_161] : memref<32x1xf32, #tpu.memory_space<vmem>>, vector<32x1xf32>
    %cst_162 = arith.constant dense<0.000000e+00> : vector<32x1xf32>
    %154 = tpu.matmul %153, %148, %cst_162 {dimension_numbers = #tpu.dot_dimension_numbers<[1], [0], [0], [1], [0, 0, 1, 1], [], []>} : vector<32x1xf32>, vector<1x1xf32>, vector<32x1xf32> -> vector<32x1xf32>
    %155 = arith.addf %152, %154 : vector<32x1xf32>
    %c0_163 = arith.constant 0 : index
    %c0_164 = arith.constant 0 : index
    %156 = vector.load %arg25[%c0_163, %c0_164] : memref<32x1xf32, #tpu.memory_space<vmem>>, vector<32x1xf32>
    %157 = arith.addf %155, %156 : vector<32x1xf32>
    %cst_165 = arith.constant 0.000000e+00 : f32
    %158 = vector.broadcast %cst_165 : f32 to vector<32x1xf32>
    %159 = arith.maximumf %157, %158 : vector<32x1xf32>
    %c0_166 = arith.constant 0 : index
    %c0_167 = arith.constant 0 : index
    %160 = vector.load %arg26[%c0_166, %c0_167] : memref<16x32xf32, #tpu.memory_space<vmem>>, vector<16x32xf32>
    %cst_168 = arith.constant dense<0.000000e+00> : vector<16x1xf32>
    %161 = tpu.matmul %160, %159, %cst_168 {dimension_numbers = #tpu.dot_dimension_numbers<[1], [0], [0], [1], [0, 0, 1, 1], [], []>} : vector<16x32xf32>, vector<32x1xf32>, vector<16x1xf32> -> vector<16x1xf32>
    %c0_169 = arith.constant 0 : index
    %c0_170 = arith.constant 0 : index
    %162 = vector.load %arg27[%c0_169, %c0_170] : memref<16x1xf32, #tpu.memory_space<vmem>>, vector<16x1xf32>
    %163 = arith.addf %161, %162 : vector<16x1xf32>
    %cst_171 = arith.constant 0.000000e+00 : f32
    %164 = vector.broadcast %cst_171 : f32 to vector<16x1xf32>
    %165 = arith.maximumf %163, %164 : vector<16x1xf32>
    %c0_172 = arith.constant 0 : index
    %c0_173 = arith.constant 0 : index
    %166 = vector.load %arg28[%c0_172, %c0_173] : memref<1x16xf32, #tpu.memory_space<vmem>>, vector<1x16xf32>
    %cst_174 = arith.constant dense<0.000000e+00> : vector<1x1xf32>
    %167 = tpu.matmul %166, %165, %cst_174 {dimension_numbers = #tpu.dot_dimension_numbers<[1], [0], [0], [1], [0, 0, 1, 1], [], []>} : vector<1x16xf32>, vector<16x1xf32>, vector<1x1xf32> -> vector<1x1xf32>
    %c0_175 = arith.constant 0 : index
    %c0_176 = arith.constant 0 : index
    %168 = vector.load %arg29[%c0_175, %c0_176] : memref<1x1xf32, #tpu.memory_space<vmem>>, vector<1x1xf32>
    %169 = arith.addf %167, %168 : vector<1x1xf32>
    %c0_177 = arith.constant 0 : index
    %c0_178 = arith.constant 0 : index
    %c0_179 = arith.constant 0 : index
    %170 = vector.load %arg30[%c0_177, %c0_178, %c0_179] : memref<1x1x1xf32, #tpu.memory_space<vmem>>, vector<1x1x1xf32>
    %171 = vector.shape_cast %170 : vector<1x1x1xf32> to vector<1x1xf32>
    %172 = vector.shape_cast %169 : vector<1x1xf32> to vector<1x1x1xf32>
    tpu.vector_store %arg30[%c0_177, %c0_178, %c0_179], %172 {strides = array<i32>} : memref<1x1x1xf32, #tpu.memory_space<vmem>>, vector<1x1x1xf32>,
    return
  }
  func.func @transform_0(%arg0: i32) -> (i32, i32, i32) {
    %c0_i32 = arith.constant 0 : i32
    %c0_i32_0 = arith.constant 0 : i32
    %c0_i32_1 = arith.constant 0 : i32
    return %arg0, %c0_i32, %c0_i32_0 : i32, i32, i32
  }
  func.func @transform_1(%arg0: i32) -> (i32, i32, i32) {
    %c0_i32 = arith.constant 0 : i32
    %c0_i32_0 = arith.constant 0 : i32
    %c0_i32_1 = arith.constant 0 : i32
    return %arg0, %c0_i32, %c0_i32_0 : i32, i32, i32
  }
  func.func @transform_2(%arg0: i32) -> (i32, i32, i32) {
    %c0_i32 = arith.constant 0 : i32
    %c0_i32_0 = arith.constant 0 : i32
    %c0_i32_1 = arith.constant 0 : i32
    %c0_i32_2 = arith.constant 0 : i32
    return %c0_i32, %c0_i32_0, %c0_i32_1 : i32, i32, i32
  }
  func.func @transform_3(%arg0: i32) -> (i32, i32) {
    %c0_i32 = arith.constant 0 : i32
    %c0_i32_0 = arith.constant 0 : i32
    %c0_i32_1 = arith.constant 0 : i32
    return %c0_i32, %c0_i32_0 : i32, i32
  }
  func.func @transform_4(%arg0: i32) -> (i32, i32, i32) {
    %c0_i32 = arith.constant 0 : i32
    %c0_i32_0 = arith.constant 0 : i32
    %c0_i32_1 = arith.constant 0 : i32
    %c0_i32_2 = arith.constant 0 : i32
    return %c0_i32, %c0_i32_0, %c0_i32_1 : i32, i32, i32
  }
  func.func @transform_5(%arg0: i32) -> (i32, i32) {
    %c0_i32 = arith.constant 0 : i32
    %c0_i32_0 = arith.constant 0 : i32
    %c0_i32_1 = arith.constant 0 : i32
    return %c0_i32, %c0_i32_0 : i32, i32
  }
  func.func @transform_6(%arg0: i32) -> (i32, i32) {
    %c0_i32 = arith.constant 0 : i32
    %c0_i32_0 = arith.constant 0 : i32
    %c0_i32_1 = arith.constant 0 : i32
    return %c0_i32, %c0_i32_0 : i32, i32
  }
  func.func @transform_7(%arg0: i32) -> (i32, i32) {
    %c0_i32 = arith.constant 0 : i32
    %c0_i32_0 = arith.constant 0 : i32
    %c0_i32_1 = arith.constant 0 : i32
    return %c0_i32, %c0_i32_0 : i32, i32
  }
  func.func @transform_8(%arg0: i32) -> (i32, i32, i32) {
    %c0_i32 = arith.constant 0 : i32
    %c0_i32_0 = arith.constant 0 : i32
    %c0_i32_1 = arith.constant 0 : i32
    %c0_i32_2 = arith.constant 0 : i32
    return %c0_i32, %c0_i32_0, %c0_i32_1 : i32, i32, i32
  }
  func.func @transform_9(%arg0: i32) -> (i32, i32) {
    %c0_i32 = arith.constant 0 : i32
    %c0_i32_0 = arith.constant 0 : i32
    %c0_i32_1 = arith.constant 0 : i32
    return %c0_i32, %c0_i32_0 : i32, i32
  }
  func.func @transform_10(%arg0: i32) -> (i32, i32, i32) {
    %c0_i32 = arith.constant 0 : i32
    %c0_i32_0 = arith.constant 0 : i32
    %c0_i32_1 = arith.constant 0 : i32
    %c0_i32_2 = arith.constant 0 : i32
    return %c0_i32, %c0_i32_0, %c0_i32_1 : i32, i32, i32
  }
  func.func @transform_11(%arg0: i32) -> (i32, i32) {
    %c0_i32 = arith.constant 0 : i32
    %c0_i32_0 = arith.constant 0 : i32
    %c0_i32_1 = arith.constant 0 : i32
    return %c0_i32, %c0_i32_0 : i32, i32
  }
  func.func @transform_12(%arg0: i32) -> (i32, i32, i32) {
    %c0_i32 = arith.constant 0 : i32
    %c0_i32_0 = arith.constant 0 : i32
    %c0_i32_1 = arith.constant 0 : i32
    %c0_i32_2 = arith.constant 0 : i32
    return %c0_i32, %c0_i32_0, %c0_i32_1 : i32, i32, i32
  }
  func.func @transform_13(%arg0: i32) -> (i32, i32) {
    %c0_i32 = arith.constant 0 : i32
    %c0_i32_0 = arith.constant 0 : i32
    %c0_i32_1 = arith.constant 0 : i32
    return %c0_i32, %c0_i32_0 : i32, i32
  }
  func.func @transform_14(%arg0: i32) -> (i32, i32, i32) {
    %c0_i32 = arith.constant 0 : i32
    %c0_i32_0 = arith.constant 0 : i32
    %c0_i32_1 = arith.constant 0 : i32
    %c0_i32_2 = arith.constant 0 : i32
    return %c0_i32, %c0_i32_0, %c0_i32_1 : i32, i32, i32
  }
  func.func @transform_15(%arg0: i32) -> (i32, i32) {
    %c0_i32 = arith.constant 0 : i32
    %c0_i32_0 = arith.constant 0 : i32
    %c0_i32_1 = arith.constant 0 : i32
    return %c0_i32, %c0_i32_0 : i32, i32
  }
  func.func @transform_16(%arg0: i32) -> (i32, i32, i32) {
    %c0_i32 = arith.constant 0 : i32
    %c0_i32_0 = arith.constant 0 : i32
    %c0_i32_1 = arith.constant 0 : i32
    %c0_i32_2 = arith.constant 0 : i32
    return %c0_i32, %c0_i32_0, %c0_i32_1 : i32, i32, i32
  }
  func.func @transform_17(%arg0: i32) -> (i32, i32) {
    %c0_i32 = arith.constant 0 : i32
    %c0_i32_0 = arith.constant 0 : i32
    %c0_i32_1 = arith.constant 0 : i32
    return %c0_i32, %c0_i32_0 : i32, i32
  }
  func.func @transform_18(%arg0: i32) -> (i32, i32, i32) {
    %c0_i32 = arith.constant 0 : i32
    %c0_i32_0 = arith.constant 0 : i32
    %c0_i32_1 = arith.constant 0 : i32
    %c0_i32_2 = arith.constant 0 : i32
    return %c0_i32, %c0_i32_0, %c0_i32_1 : i32, i32, i32
  }
  func.func @transform_19(%arg0: i32) -> (i32, i32) {
    %c0_i32 = arith.constant 0 : i32
    %c0_i32_0 = arith.constant 0 : i32
    %c0_i32_1 = arith.constant 0 : i32
    return %c0_i32, %c0_i32_0 : i32, i32
  }
  func.func @transform_20(%arg0: i32) -> (i32, i32) {
    %c0_i32 = arith.constant 0 : i32
    %c0_i32_0 = arith.constant 0 : i32
    %c0_i32_1 = arith.constant 0 : i32
    return %c0_i32, %c0_i32_0 : i32, i32
  }
  func.func @transform_21(%arg0: i32) -> (i32, i32) {
    %c0_i32 = arith.constant 0 : i32
    %c0_i32_0 = arith.constant 0 : i32
    %c0_i32_1 = arith.constant 0 : i32
    return %c0_i32, %c0_i32_0 : i32, i32
  }
  func.func @transform_22(%arg0: i32) -> (i32, i32) {
    %c0_i32 = arith.constant 0 : i32
    %c0_i32_0 = arith.constant 0 : i32
    %c0_i32_1 = arith.constant 0 : i32
    return %c0_i32, %c0_i32_0 : i32, i32
  }
  func.func @transform_23(%arg0: i32) -> (i32, i32) {
    %c0_i32 = arith.constant 0 : i32
    %c0_i32_0 = arith.constant 0 : i32
    %c0_i32_1 = arith.constant 0 : i32
    return %c0_i32, %c0_i32_0 : i32, i32
  }
  func.func @transform_24(%arg0: i32) -> (i32, i32) {
    %c0_i32 = arith.constant 0 : i32
    %c0_i32_0 = arith.constant 0 : i32
    %c0_i32_1 = arith.constant 0 : i32
    return %c0_i32, %c0_i32_0 : i32, i32
  }
  func.func @transform_25(%arg0: i32) -> (i32, i32) {
    %c0_i32 = arith.constant 0 : i32
    %c0_i32_0 = arith.constant 0 : i32
    %c0_i32_1 = arith.constant 0 : i32
    return %c0_i32, %c0_i32_0 : i32, i32
  }
  func.func @transform_26(%arg0: i32) -> (i32, i32) {
    %c0_i32 = arith.constant 0 : i32
    %c0_i32_0 = arith.constant 0 : i32
    %c0_i32_1 = arith.constant 0 : i32
    return %c0_i32, %c0_i32_0 : i32, i32
  }
  func.func @transform_27(%arg0: i32) -> (i32, i32) {
    %c0_i32 = arith.constant 0 : i32
    %c0_i32_0 = arith.constant 0 : i32
    %c0_i32_1 = arith.constant 0 : i32
    return %c0_i32, %c0_i32_0 : i32, i32
  }
  func.func @transform_28(%arg0: i32) -> (i32, i32) {
    %c0_i32 = arith.constant 0 : i32
    %c0_i32_0 = arith.constant 0 : i32
    %c0_i32_1 = arith.constant 0 : i32
    return %c0_i32, %c0_i32_0 : i32, i32
  }
  func.func @transform_29(%arg0: i32) -> (i32, i32, i32) {
    %c0_i32 = arith.constant 0 : i32
    %c0_i32_0 = arith.constant 0 : i32
    %c0_i32_1 = arith.constant 0 : i32
    return %arg0, %c0_i32, %c0_i32_0 : i32, i32, i32
  }
}

</mosaic_0001>

<bundles_post_ra>
// kernel: hybrid_tcn_forward.1
= control target key start
LH: loop header
LB: loop body
LE: loop exit
PB: predicated region body
PF: predicated region fallthrough
CT: control target
= control target key end

     0   :  { %s3272_s6 = smov 1   ;;  %s3273_s10 = smov 2   ;;  %s3649_s0 = inlined_call_operand.smem [shape: u32[30], index: -1, kind: input, shape index: {}] }
   0x1   :  { %s3320_s5 = sld [smem:[%s3649_s0]]   ;;  %s3274_s14 = smov 3  }
   0x2   :  { %s3325_s9 = sld [smem:[%s3649_s0 + %s3272_s6]]   ;;  %s3275_s18 = smov 4  }
   0x3   :  { %s3330_s13 = sld [smem:[%s3649_s0 + %s3273_s10]]   ;;  %s3276_s22 = smov 5  }
   0x4   :  { %s3335_s17 = sld [smem:[%s3649_s0 + %s3274_s14]]   ;;  %s3277_s26 = smov 6  }
   0x5   :  { %s3340_s21 = sld [smem:[%s3649_s0 + %s3275_s18]]   ;;  %s3278_s30 = smov 7  }
   0x6   :  { %s3345_s25 = sld [smem:[%s3649_s0 + %s3276_s22]]   ;;  %s3279_s4 = smov 8  }
   0x7   :  { %s3350_s29 = sld [smem:[%s3649_s0 + %s3277_s26]]   ;;  %s3280_s10 = smov 9  }
   0x8   :  { %3658 = sst [smem:[#allocation8_spill]] %s3325_s9  ;;  %s3281_s15 = smov 10  }
   0x9   :  { %s3355_s3 = sld [smem:[%s3649_s0 + %s3278_s30]]   ;;  %s3282_s20 = smov 11  }
   0xa   :  { %s3360_s8 = sld [smem:[%s3649_s0 + %s3279_s4]]   ;;  %s3283_s26 = smov 12  }
   0xb   :  { %s3365_s14 = sld [smem:[%s3649_s0 + %s3280_s10]]   ;;  %s3284_s1 = smov 13  }
   0xc   :  { %s3370_s19 = sld [smem:[%s3649_s0 + %s3281_s15]]   ;;  %s3285_s7 = smov 14  }
   0xd   :  { %s3375_s24 = sld [smem:[%s3649_s0 + %s3282_s20]]   ;;  %s3286_s15 = smov 15  }
   0xe   :  { %s3380_s30 = sld [smem:[%s3649_s0 + %s3283_s26]]   ;;  %s3287_s22 = smov 16  }
   0xf   :  { %s3385_s6 = sld [smem:[%s3649_s0 + %s3284_s1]]   ;;  %s3288_s28 = smov 17  }
  0x10   :  { %s3390_s12 = sld [smem:[%s3649_s0 + %s3285_s7]]   ;;  %s3289_s10 = smov 18  }
  0x11   :  { %s3395_s20 = sld [smem:[%s3649_s0 + %s3286_s15]]   ;;  %s3290_s16 = smov 20  }
  0x12   :  { %s3400_s27 = sld [smem:[%s3649_s0 + %s3287_s22]]   ;;  %s3291_s23 = smov 22  }
  0x13   :  { %s2944_s4 = sld [smem:[%s3649_s0 + %s3288_s28]]   ;;  %s3292_s1 = smov 23  }
  0x14   :  { %s3408_s9 = sld [smem:[%s3649_s0 + %s3289_s10]]   ;;  %s3293_s10 = smov 24  }
  0x15   :  { %s3297_s7 = smov 29  }
  0x16   :  { %3659 = sst [smem:[#allocation9_spill]] %s3390_s12 }
  0x17   :  { %3660 = sst [smem:[#allocation10_spill]] %s3395_s20 }
  0x18   :  { %3661 = sst [smem:[#allocation11_spill]] %s3400_s27 }
  0x19   :  { %s3413_s12 = sld [smem:[%s3649_s0 + %s3290_s16]]   ;;  %s3294_s16 = smov 25   ;;  %v64_v0 = vstv %s2944_s4 }
  0x1a   :  { %3662 = sst [smem:[#allocation12_spill]] %s3408_s9  ;;  %65 = vst [vmem:[#allocation4] sm:$0x1] %v64_v0  ;;  %s3298_s4 = smov 19  }
  0x1b   :  { %s3418_s27 = sld [smem:[%s3649_s0 + %s3291_s23]]   ;;  %s3295_s23 = smov 26  }
  0x1c   :  { %s3423_s20 = sld [smem:[%s3649_s0 + %s3292_s1]]   ;;  %s3296_s1 = smov 27  }
  0x1d   :  { %s3428_s9 = sld [smem:[%s3649_s0 + %s3293_s10]]  }
  0x1e   :  { %s3438_s28 = sld [smem:[%s3649_s0 + %s3295_s23]]   ;;  %s3299_s23 = smov 21  }
  0x1f   :  { %3663 = sst [smem:[#allocation13_spill]] %s3413_s12 }
  0x20   :  { %s3433_s12 = sld [smem:[%s3649_s0 + %s3294_s16]]  }
  0x21   :  { %3664 = sst [smem:[#allocation14_spill]] %s3418_s27 }
  0x22   :  { %3665 = sst [smem:[#allocation15_spill]] %s3423_s20  ;;  %s3300_s20 = smov 28  }
  0x23   :  { %3666 = sst [smem:[#allocation16_spill]] %s3428_s9  ;;  %s3459_s9 = smov 0  }
  0x24   :  { %3668 = sst [smem:[#allocation18_spill]] %s3438_s28 }
  0x25   :  { %s3443_s10 = sld [smem:[%s3649_s0 + %s3296_s1]]  }
  0x26   :  { %3667 = sst [smem:[#allocation17_spill]] %s3433_s12 }
  0x27   :  { %s3448_s16 = sld [smem:[%s3649_s0 + %s3297_s7]]  }
  0x28   :  { %s2946_s22 = sld [smem:[%s3649_s0 + %s3298_s4]]  }
  0x29   :  { %s2948_s12 = sld [smem:[%s3649_s0 + %s3299_s23]]  }
  0x2a   :  { %s2955_s2 = sld [smem:[%s3649_s0 + %s3300_s20]]  }
  0x2e   :  { %v66_v1 = vstv %s2946_s22 }
  0x2f   :  { %67 = vst [vmem:[#allocation5] sm:$0x1] %v66_v1  ;;  %v68_v2 = vstv %s2948_s12 }
  0x30   :  { %69 = vst [vmem:[#allocation6] sm:$0x1] %v68_v2  ;;  %v70_v3 = vstv %s2955_s2 }
  0x31   :  { %71 = vst [vmem:[#allocation7] sm:$0x1] %v70_v3 }
  0x32 LB: > { %s2957_s28 = sadd.s32 4294967295, %s3270_s9   ;;  %p2961_p0 = scmp.ge.s32.totalorder %s3270_s9, 1  ;;  %s3270_s9 = sphi %s3459_s9, %s77_s9  }
  0x33   : > { %p833_p1 = scmp.lt.s32.totalorder %s3270_s9, 5 }
  0x35   : > { %p834_p2 = pnand %p2961_p0, %p833_p1 }
  0x36   : > { %p910_p3 = scmp.lt.s32.totalorder (!%p834_p2), %s2957_s28, 3  ;;  %v926_v4 = vlaneseq (!%p834_p2)  ;;  %vm921_vm0 = vcmask (!%p834_p2), 64512   ;;  %v3301_v5 = vmov (!%p834_p2), 0.0   ;;  %s3302_s12 = smov (!%p834_p2), 8   ;;  %vm3303_vm1 = vmmov (!%p834_p2), 0   ;;  %v1096_v13 = vld [vmem:[%s3335_s17] sm:$0xff] (!%p834_p2) }
  0x37   : > { %837 = sbr.rel (%p834_p2) target bundleno = 4651 (0x122b), region = 136  ;;  %922 = vst.msk [vmem:[#allocation2] sm:$0xff] (!%p834_p2), %vm921_vm0, %v3301_v5  ;;  %923 = vst.msk [vmem:[#allocation3] sm:$0xff] (!%p834_p2), %vm921_vm0, %v3301_v5  ;;  %3067 = vmatprep.subr.mxu0 (!%p834_p2), %v3301_v5  ;;  %3072 = vmatprep.subr.mxu1 (!%p834_p2), %v3301_v5  ;;  %vm933_vm2 = vcmask (!%p834_p2), 188480   ;;  %v3304_v10 = vmov (!%p834_p2), 0   ;;  %s3305_s20 = smov (!%p834_p2), 121  }
  0x38   : > { %v927_v6 = vshrl.u32 (!%p834_p2), %v926_v4, 7  ;;  %3069 = vmatprep.mubr.msk.f32.mxu0 (!%p834_p2), %vm3303_vm1, %v3301_v5  ;;  %3074 = vmatprep.mubr.msk.f32.mxu1 (!%p834_p2), %vm3303_vm1, %v3301_v5  ;;  %s3306_s7 = smov (!%p834_p2), 120   ;;  %vm946_vm3 = vcmask (!%p834_p2), 1040384   ;;  %v2964_v14 = vld [vmem:[%s3330_s13 + $0x8] sm:$0xff] (!%p834_p2)  ;;  %vm942_vm4 = vcmask (!%p834_p2), 7168   ;;  %v936_v15 = vld [vmem:[%s3330_s13] sm:$0xff] (!%p834_p2) }
  0x39   : > { %3262 = vset.pattern.permute.xlu1 (!%p834_p2), %v3304_v10  ;;  %3263 = vset.pattern.permute.xlu0 (!%p834_p2), %v3304_v10  ;;  %vm1108_vm5 = vcmask (!%p834_p2), 195648   ;;  %v1267_v28 = vld [vmem:[%s3345_s25] sm:$0xff] (!%p834_p2)  ;;  %v2969_v30 = vld [vmem:[%s3340_s21 + $0x8] sm:$0xff] (!%p834_p2)  ;;  %s3307_s11 = smov (!%p834_p2), 122   ;;  %s3308_s4 = smov (!%p834_p2), 124   ;;  %vm2605_vm6 = vcmask (!%p834_p2), 1043456  }
  0x3a   : > { %v3477_v7 = vsub.s32 (!%p834_p2), 0, %v927_v6  ;;  %v1276_v29 = vld [vmem:[%s3355_s3] sm:$0xff] (!%p834_p2)  ;;  %v2974_v52 = vld [vmem:[%s3360_s8 + $0x8] sm:$0xff] (!%p834_p2)  ;;  %s3669_s15 = sld [smem:[#allocation10_spill]] (!%p834_p2)  ;;  %s3670_s18 = sld [smem:[#allocation9_spill]] (!%p834_p2)  ;;  %vm3310_vm7 = vmmov (!%p834_p2), 1  }
  0x3b   : > { %v1111_v31 = vld [vmem:[%s3340_s21] sm:$0xff] (!%p834_p2)  ;;  %v2977_v3 = vld [vmem:[%s3370_s19 + $0x8] sm:$0xff] (!%p834_p2)  ;;  %s3671_s22 = sld [smem:[#allocation11_spill]] (!%p834_p2)  ;;  %s3672_s23 = sld [smem:[#allocation12_spill]] (!%p834_p2)  ;;  %vm3194_vm8 = vmpackc.low (!%p834_p2), %vm2605_vm6, %vm3310_vm7  ;;  %vm2592_vm9 = vcmask (!%p834_p2), 97280   ;;  %vm2710_vm10 = vcmask (!%p834_p2), 261120  }
  0x3c   : > { %v1275_v34 = vld [vmem:[%s3350_s29] sm:$0xff] (!%p834_p2)  ;;  %s3673_s26 = sld [smem:[#allocation13_spill]] (!%p834_p2)  ;;  %s3674_s27 = sld [smem:[#allocation15_spill]] (!%p834_p2)  ;;  %vm2796_vm11 = vcmask (!%p834_p2), 130048   ;;  %vm2870_vm12 = vcmask (!%p834_p2), 0  }
  0x3d   : > { %v1521_v51 = vld [vmem:[%s3365_s14] sm:$0xff] (!%p834_p2)  ;;  %s3675_s1 = sld [smem:[#allocation8_spill]] (!%p834_p2)  ;;  %s3309_s2 = smov (!%p834_p2), 105  }
  0x3e   : > { %s3681_s28 = smov (!%p910_p3, %s2957_s28), 3  ;;  %v1365_v53 = vld [vmem:[%s3360_s8] sm:$0xff] }
  0x3f   : > { %s912_s0 = scalar_lea.vmem %s3320_s5, %s3681_s28  ;;  %v1691_v2 = vld [vmem:[%s3375_s24] sm:$0xff] }
  0x40   : > { %v3479_v8 = vld [vmem:[%s912_s0] sm:$0x1]  ;;  %s3010_s0 = sshll.u32 %s3681_s28, 4 }
  0x41   : > { %v929_v9 = vrot.slane %v3479_v8, %v3477_v7  ;;  %v1535_v4 = vld [vmem:[%s3370_s19] sm:$0xff] }
  0x43   : > { %930 = vrot.lane.b32.xlu0 %v929_v9, %s3302_s12 }
  0xb5   : > { %v931_v11 = vpop.permute.xlu0 %930 }
  0xb6   : > { %934 = vst.msk [vmem:[#allocation2] sm:$0x1] %vm933_vm2, %v931_v11 }
  0xbd   : > { %v935_v12 = vld [vmem:[#allocation2] sm:$0x1] }
  0xbe   : > { %1019 = vrot.lane.b32.xlu1 %v935_v12, %s3305_s20  ;;  %940 = vrot.lane.b32.xlu0 %v935_v12, %s3306_s7 }
  0xc2   : > { %1099 = vperm.xlu1 %3262, %v1096_v13  }
 0x130   : > { %v1020_v16 = vpop.permute.xlu1 %1019  ;;  %v941_v17 = vpop.permute.xlu0 %940 }
 0x131   : > { %3068 = vmatpush3.msk.msra.mxu0 %vm946_vm3, %v941_v17  ;;  %3073 = vmatpush3.msk.msra.mxu1 %vm946_vm3, %v1020_v16 }
 0x132   : > { %3070 = vmatmul.mubr.msk.f32.vlgmr.msra.gmra.mrb[0].mxu0 %vm942_vm4, %v2964_v14  ;;  %3075 = vmatmul.mubr.msk.f32.vlgmr.msra.gmra.mrb[0].mxu1 %vm942_vm4, %v936_v15 }
 0x133   : > { %3077 = vmatprep.subr.mxu0 %v3301_v5  ;;  %3082 = vmatprep.subr.mxu1 %v3301_v5 }
 0x134   : > { %3079 = vmatprep.mubr.msk.f32.mxu0 %vm3303_vm1, %v3301_v5  ;;  %3084 = vmatprep.mubr.msk.f32.mxu1 %vm3303_vm1, %v3301_v5 }
 0x141   : > { %v1100_v18 = vpop.permute.xlu1 %1099 }
 0x205   : > { %v1015_v19 = vpop.f32.mrb[0].mxu0  ;;  %v1092_v20 = vpop.f32.mrb[0].mxu1 }
 0x206   : > { %v1093_v21 = vadd.f32 %v1092_v20, %v1015_v19  ;;  %v3071_v22 = vpop.f32.mrb[1].mxu0  ;;  %v3076_v23 = vpop.f32.mrb[1].mxu1 }
 0x207   : > { %v2980_v22 = vld [vmem:[%s3380_s30 + $0x8] sm:$0xff]  ;;  %v1707_v23 = vld [vmem:[%s3380_s30] sm:$0xff] }
 0x208   : > { %v1102_v24 = vadd.f32 %v1100_v18, %v1093_v21  ;;  %v1863_v21 = vld [vmem:[%s3385_s6] sm:$0xff] }
 0x20a   : > { %v1103_v25 = vmax.f32 %v1102_v24, 0.0 }
 0x20c   : > { %1105 = vrot.lane.b32.xlu0 %v1103_v25, %s3302_s12 }
 0x27e   : > { %v1106_v26 = vpop.permute.xlu0 %1105 }
 0x27f   : > { %1109 = vst.msk [vmem:[#allocation3] sm:$0xff] %vm1108_vm5, %v1106_v26 }
 0x286   : > { %v1110_v27 = vld [vmem:[#allocation3] sm:$0xff] }
 0x287   : > { %1191 = vrot.lane.b32.xlu0 %v1110_v27, %s3305_s20  ;;  %1115 = vrot.lane.b32.xlu1 %v1110_v27, %s3306_s7  ;;  %s917_s20 = scalar_lea.vmem %s3675_s1, %s3010_s0 }
 0x28b   : > { %1270 = vperm.xlu1 %3262, %v1267_v28   ;;  %1279 = vperm.xlu0 %3263, %v1276_v29  }
 0x2f9   : > { %v1192_v32 = vpop.permute.xlu0 %1191  ;;  %v1116_v33 = vpop.permute.xlu1 %1115 }
 0x2fa   : > { %3078 = vmatpush3.msra.mxu0 %v1116_v33  ;;  %3083 = vmatpush3.msra.mxu1 %v1192_v32 }
 0x2fb   : > { %3080 = vmatmul.mubr.msk.f32.vlgmr.msra.gmra.mrb[2].mxu0 %vm921_vm0, %v2969_v30  ;;  %3085 = vmatmul.mubr.msk.f32.vlgmr.msra.gmra.mrb[2].mxu1 %vm921_vm0, %v1111_v31 }
 0x2fc   : > { %3087 = vmatprep.subr.mxu0 %v3301_v5  ;;  %3089 = vmatprep.mubr.msk.f32.mxu0 %vm3303_vm1, %v3301_v5 }
 0x2fd   : > { %3088 = vmatpush3.msk.msra.mxu0 %vm946_vm3, %v3479_v8  ;;  %3092 = vmatprep.subr.mxu1 %v3301_v5 }
 0x2fe   : > { %3097 = vmatprep.subr.mxu0 %v3301_v5  ;;  %3094 = vmatprep.mubr.msk.f32.mxu1 %vm3303_vm1, %v3301_v5 }
 0x2ff   : > { %3090 = vmatmul.mubr.msk.f32.vlgmr.msra.gmra.mrb[4].mxu0 %vm942_vm4, %v1275_v34 }
 0x300   : > { %3099 = vmatprep.mubr.msk.f32.mxu0 %vm3303_vm1, %v3301_v5 }
 0x30a   : > { %v1271_v40 = vpop.permute.xlu1 %1270  ;;  %v1280_v41 = vpop.permute.xlu0 %1279 }
 0x3ce   : > { %v1187_v35 = vpop.f32.mrb[2].mxu0  ;;  %v1263_v36 = vpop.f32.mrb[2].mxu1 }
 0x3cf   : > { %v1264_v37 = vadd.f32 %v1263_v36, %v1187_v35  ;;  %v3081_v38 = vpop.f32.mrb[3].mxu0  ;;  %v3086_v39 = vpop.f32.mrb[3].mxu1  ;;  %v2033_v36 = vld [vmem:[%s3669_s15] sm:$0xff]  ;;  %s920_s15 = scalar_lea.vmem %s3448_s16, %s3681_s28 }
 0x3d0   : > { %v1877_v38 = vld [vmem:[%s3670_s18] sm:$0xff] }
 0x3d1   : > { %v1273_v42 = vadd.f32 %v1271_v40, %v1264_v37  ;;  %v2983_v37 = vld [vmem:[%s3670_s18 + $0x8] sm:$0xff] }
 0x3d2   : > { %v1353_v43 = vpop.f32.mrb[4].mxu0 }
 0x3d3   : > { %v1274_v44 = vmax.f32 %v1273_v42, 0.0  ;;  %v1354_v45 = vadd.f32 %v1353_v43, %v1280_v41  ;;  %v3091_v46 = vpop.f32.mrb[5].mxu0 }
 0x3d5   : > { %v1357_v47 = vadd.f32 %v1354_v45, %v1274_v44 }
 0x3d7   : > { %v1358_v48 = vmax.f32 %v1357_v47, 0.0 }
 0x3d9   : > { %1360 = vrot.lane.b32.xlu1 %v1358_v48, %s3302_s12 }
 0x44b   : > { %v1361_v49 = vpop.permute.xlu1 %1360 }
 0x44c   : > { %1363 = vst.msk [vmem:[#allocation2] sm:$0xff] %vm1108_vm5, %v1361_v49 }
 0x453   : > { %v1364_v50 = vld [vmem:[#allocation2] sm:$0xff] }
 0x454   : > { %1445 = vrot.lane.b32.xlu0 %v1364_v50, %s3307_s11  ;;  %1369 = vrot.lane.b32.xlu1 %v1364_v50, %s3306_s7 }
 0x458   : > { %1524 = vperm.xlu1 %3262, %v1521_v51   ;;  %v2202_v51 = vld [vmem:[#allocation4] sm:$0x1] }
 0x4c6   : > { %v1446_v54 = vpop.permute.xlu0 %1445  ;;  %v1370_v55 = vpop.permute.xlu1 %1369 }
 0x4c7   : > { %3093 = vmatpush3.msra.mxu1 %v1370_v55  ;;  %3098 = vmatpush3.msra.mxu0 %v1446_v54  ;;  %v2986_v55 = vld [vmem:[%s3671_s22 + $0x1] sm:$0x1] }
 0x4c8   : > { %3095 = vmatmul.mubr.msk.f32.vlgmr.msra.gmra.mrb[4].mxu1 %vm921_vm0, %v2974_v52  ;;  %3100 = vmatmul.mubr.msk.f32.vlgmr.msra.gmra.mrb[6].mxu0 %vm921_vm0, %v1365_v53  ;;  %v2049_v53 = vld [vmem:[%s3671_s22] sm:$0x1] }
 0x4c9   : > { %3102 = vmatprep.subr.mxu1 %v3301_v5  ;;  %3107 = vmatprep.subr.mxu0 %v3301_v5 }
 0x4ca   : > { %3104 = vmatprep.mubr.msk.f32.mxu1 %vm3303_vm1, %v3301_v5  ;;  %3109 = vmatprep.mubr.msk.f32.mxu0 %vm3303_vm1, %v3301_v5 }
 0x4d7   : > { %v1525_v61 = vpop.permute.xlu1 %1524 }
 0x59b   : > { %v1441_v56 = vpop.f32.mrb[4].mxu1  ;;  %v1517_v57 = vpop.f32.mrb[6].mxu0 }
 0x59c   : > { %v1518_v58 = vadd.f32 %v1517_v57, %v1441_v56  ;;  %v3096_v59 = vpop.f32.mrb[5].mxu1  ;;  %v3101_v60 = vpop.f32.mrb[7].mxu0 }
 0x59e   : > { %v1527_v62 = vadd.f32 %v1525_v61, %v1518_v58 }
 0x5a0   : > { %v1528_v63 = vmax.f32 %v1527_v62, 0.0 }
 0x5a2   : > { %1530 = vrot.lane.b32.xlu0 %v1528_v63, %s3302_s12 }
 0x614   : > { %v1531_v0 = vpop.permute.xlu0 %1530 }
 0x615   : > { %1533 = vst.msk [vmem:[#allocation3] sm:$0xff] %vm1108_vm5, %v1531_v0 }
 0x61c   : > { %v1534_v1 = vld [vmem:[#allocation3] sm:$0xff] }
 0x61d   : > { %1615 = vrot.lane.b32.xlu0 %v1534_v1, %s3307_s11  ;;  %1539 = vrot.lane.b32.xlu1 %v1534_v1, %s3306_s7  ;;  %s3678_s11 = sld [smem:[#allocation16_spill]] }
 0x621   : > { %1694 = vperm.xlu1 %3262, %v1691_v2   ;;  %v2376_v2 = vld [vmem:[#allocation5] sm:$0x1] }
 0x68f   : > { %v1616_v6 = vpop.permute.xlu0 %1615  ;;  %v1540_v8 = vpop.permute.xlu1 %1539 }
 0x690   : > { %3103 = vmatpush3.msra.mxu1 %v1540_v8  ;;  %3108 = vmatpush3.msra.mxu0 %v1616_v6  ;;  %v2389_v8 = vld [vmem:[#allocation6] sm:$0x1] }
 0x691   : > { %3105 = vmatmul.mubr.msk.f32.vlgmr.msra.gmra.mrb[6].mxu1 %vm921_vm0, %v2977_v3  ;;  %3110 = vmatmul.mubr.msk.f32.vlgmr.msra.gmra.mrb[8].mxu0 %vm921_vm0, %v1535_v4  ;;  %v2220_v4 = vld [vmem:[%s3672_s23] sm:$0x1] }
 0x692   : > { %3112 = vmatprep.subr.mxu1 %v3301_v5  ;;  %3117 = vmatprep.subr.mxu0 %v3301_v5 }
 0x693   : > { %3114 = vmatprep.mubr.msk.f32.mxu1 %vm3303_vm1, %v3301_v5  ;;  %3119 = vmatprep.mubr.msk.f32.mxu0 %vm3303_vm1, %v3301_v5 }
 0x6a0   : > { %v1695_v14 = vpop.permute.xlu1 %1694 }
 0x764   : > { %v1611_v9 = vpop.f32.mrb[6].mxu1  ;;  %v1687_v10 = vpop.f32.mrb[8].mxu0 }
 0x765   : > { %v1688_v11 = vadd.f32 %v1687_v10, %v1611_v9  ;;  %v3106_v12 = vpop.f32.mrb[7].mxu1  ;;  %v3111_v13 = vpop.f32.mrb[9].mxu0  ;;  %v2989_v9 = vld [vmem:[%s3672_s23 + $0x1] sm:$0x1] }
 0x767   : > { %v1697_v15 = vadd.f32 %v1695_v14, %v1688_v11  ;;  %v2388_v11 = vld [vmem:[%s3673_s26] sm:$0x1] }
 0x769   : > { %v1698_v16 = vmax.f32 %v1697_v15, 0.0 }
 0x76b   : > { %v1699_v17 = vadd.f32 %v1698_v16, %v1358_v48 }
 0x76d   : > { %v1700_v18 = vmax.f32 %v1699_v17, 0.0 }
 0x76f   : > { %1702 = vrot.lane.b32.xlu0 %v1700_v18, %s3302_s12 }
 0x7e1   : > { %v1703_v19 = vpop.permute.xlu0 %1702 }
 0x7e2   : > { %1705 = vst.msk [vmem:[#allocation2] sm:$0xff] %vm1108_vm5, %v1703_v19 }
 0x7e9   : > { %v1706_v20 = vld [vmem:[#allocation2] sm:$0xff] }
 0x7ea   : > { %1787 = vrot.lane.b32.xlu0 %v1706_v20, %s3308_s4  ;;  %1711 = vrot.lane.b32.xlu1 %v1706_v20, %s3306_s7 }
 0x7ee   : > { %1866 = vperm.xlu1 %3262, %v1863_v21  }
 0x85c   : > { %v1788_v24 = vpop.permute.xlu0 %1787  ;;  %v1712_v25 = vpop.permute.xlu1 %1711 }
 0x85d   : > { %3113 = vmatpush3.msra.mxu1 %v1712_v25  ;;  %3118 = vmatpush3.msra.mxu0 %v1788_v24 }
 0x85e   : > { %3115 = vmatmul.mubr.msk.f32.vlgmr.msra.gmra.mrb[8].mxu1 %vm921_vm0, %v2980_v22  ;;  %3120 = vmatmul.mubr.msk.f32.vlgmr.msra.gmra.mrb[10].mxu0 %vm921_vm0, %v1707_v23 }
 0x85f   : > { %3122 = vmatprep.subr.mxu1 %v3301_v5  ;;  %3127 = vmatprep.subr.mxu0 %v3301_v5 }
 0x860   : > { %3124 = vmatprep.mubr.msk.f32.mxu1 %vm3303_vm1, %v3301_v5  ;;  %3129 = vmatprep.mubr.msk.f32.mxu0 %vm3303_vm1, %v3301_v5 }
 0x86d   : > { %v1867_v31 = vpop.permute.xlu1 %1866 }
 0x931   : > { %v1783_v26 = vpop.f32.mrb[8].mxu1  ;;  %v1859_v27 = vpop.f32.mrb[10].mxu0 }
 0x932   : > { %v1860_v28 = vadd.f32 %v1859_v27, %v1783_v26  ;;  %v3116_v29 = vpop.f32.mrb[9].mxu1  ;;  %v3121_v30 = vpop.f32.mrb[11].mxu0 }
 0x933   : > { %v2480_v30 = vld [vmem:[%s917_s20] sm:$0xff] }
 0x934   : > { %v1869_v32 = vadd.f32 %v1867_v31, %v1860_v28  ;;  %v2486_v28 = vld [vmem:[%s3674_s27] sm:$0xff]  ;;  %v2481_v31 = vld [vmem:[%s917_s20 + $0x8] sm:$0xf] }
 0x936   : > { %v1870_v33 = vmax.f32 %v1869_v32, 0.0  ;;  %v3193_v32 = vpack.c.bf16 %v2481_v31, %v2480_v30 }
 0x938   : > { %1872 = vrot.lane.b32.xlu0 %v1870_v33, %s3302_s12 }
 0x9aa   : > { %v1873_v34 = vpop.permute.xlu0 %1872 }
 0x9ab   : > { %1875 = vst.msk [vmem:[#allocation3] sm:$0xff] %vm1108_vm5, %v1873_v34  ;;  %v2487_v34 = vld [vmem:[%s3674_s27 + $0x8] sm:$0xff] }
 0x9b2   : > { %v1876_v35 = vld [vmem:[#allocation3] sm:$0xff] }
 0x9b3   : > { %1957 = vrot.lane.b32.xlu0 %v1876_v35, %s3308_s4  ;;  %1881 = vrot.lane.b32.xlu1 %v1876_v35, %s3306_s7  ;;  %v2488_v35 = vld [vmem:[%s3674_s27 + $0x10] sm:$0xff]  ;;  %s3679_s4 = sld [smem:[#allocation18_spill]] }
 0x9b7   : > { %2036 = vperm.xlu1 %3262, %v2033_v36   ;;  %v2489_v36 = vld [vmem:[%s3674_s27 + $0x18] sm:$0xff] }
 0xa25   : > { %v1958_v39 = vpop.permute.xlu0 %1957  ;;  %v1882_v40 = vpop.permute.xlu1 %1881 }
 0xa26   : > { %3123 = vmatpush3.msra.mxu1 %v1882_v40  ;;  %3128 = vmatpush3.msra.mxu0 %v1958_v39 }
 0xa27   : > { %3125 = vmatmul.mubr.msk.f32.vlgmr.msra.gmra.mrb[10].mxu1 %vm921_vm0, %v2983_v37  ;;  %3130 = vmatmul.mubr.msk.f32.vlgmr.msra.gmra.mrb[12].mxu0 %vm921_vm0, %v1877_v38 }
 0xa28   : > { %3137 = vmatprep.subr.mxu0 %v3301_v5  ;;  %3132 = vmatprep.subr.mxu1 %v3301_v5 }
 0xa29   : > { %3139 = vmatprep.mubr.msk.f32.mxu0 %vm3303_vm1, %v3301_v5  ;;  %3134 = vmatprep.mubr.msk.f32.mxu1 %vm3303_vm1, %v3301_v5 }
 0xa36   : > { %v2037_v46 = vpop.permute.xlu1 %2036 }
 0xafa   : > { %v1953_v41 = vpop.f32.mrb[10].mxu1  ;;  %v2029_v42 = vpop.f32.mrb[12].mxu0 }
 0xafb   : > { %v2030_v43 = vadd.f32 %v2029_v42, %v1953_v41  ;;  %v3126_v44 = vpop.f32.mrb[11].mxu1  ;;  %v3131_v45 = vpop.f32.mrb[13].mxu0  ;;  %v2695_v42 = vld [vmem:[%s3678_s11 + $0x8] sm:$0xff] }
 0xafd   : > { %v2039_v47 = vadd.f32 %v2037_v46, %v2030_v43  ;;  %v2694_v43 = vld [vmem:[%s3678_s11] sm:$0xff] }
 0xaff   : > { %v2040_v48 = vmax.f32 %v2039_v47, 0.0 }
 0xb01   : > { %v2041_v49 = vadd.f32 %v2040_v48, %v1700_v18  ;;  %v2697_v48 = vld [vmem:[%s3678_s11 + $0x18] sm:$0xff] }
 0xb03   : > { %v2042_v50 = vmax.f32 %v2041_v49, 0.0 }
 0xb05   : > { %2044 = vrot.lane.b32.xlu0 %v2042_v50, %s3302_s12 }
 0xb09   : > { %2205 = vperm.xlu0 %3263, %v2202_v51  }
 0xb77   : > { %v2045_v52 = vpop.permute.xlu0 %2044 }
 0xb78   : > { %2047 = vst.msk [vmem:[#allocation2] sm:$0xff] %vm1108_vm5, %v2045_v52 }
 0xb7f   : > { %v2048_v54 = vld [vmem:[#allocation2] sm:$0xff] }
 0xb80   : > { %2053 = vrot.lane.b32.xlu1 %v2048_v54, %s3306_s7  ;;  %3138 = vmatpush3.msra.mxu0 %v2048_v54 }
 0xb81   : > { %3140 = vmatmul.mubr.msk.f32.vlgmr.msra.gmra.mrb[14].mxu0 %vm921_vm0, %v2049_v53  ;;  %3147 = vmatprep.subr.mxu0 %v3301_v5 }
 0xb82   : > { %3149 = vmatprep.mubr.msk.f32.mxu0 %vm3303_vm1, %v3301_v5 }
 0xb88   : > { %v2206_v59 = vpop.permute.xlu0 %2205 }
 0xb89   : > { %v2211_v61 = vrot.slane %v2206_v59, %v3477_v7 }
 0xbf2   : > { %v2054_v56 = vpop.permute.xlu1 %2053 }
 0xbf3   : > { %3133 = vmatpush3.msra.mxu1 %v2054_v56 }
 0xbf4   : > { %3135 = vmatmul.mubr.msk.f32.vlgmr.msra.gmra.mrb[12].mxu1 %vm921_vm0, %v2986_v55  ;;  %3142 = vmatprep.subr.mxu1 %v3301_v5 }
 0xbf5   : > { %3144 = vmatprep.mubr.msk.f32.mxu1 %vm3303_vm1, %v3301_v5 }
 0xc54   : > { %v2198_v57 = vpop.f32.mrb[14].mxu0 }
 0xc55   : > { %v3141_v58 = vpop.f32.mrb[15].mxu0 }
 0xcc7   : > { %v2125_v60 = vpop.f32.mrb[12].mxu1 }
 0xcc8   : > { %v2199_v62 = vadd.f32 %v2198_v57, %v2125_v60  ;;  %v3136_v63 = vpop.f32.mrb[13].mxu1 }
 0xcc9   : > { %v2708_v63 = vld [vmem:[%s3679_s4] sm:$0xff] }
 0xcca   : > { %v2212_v0 = vadd.f32 %v2211_v61, %v2199_v62  ;;  %v3311_v61 = vmov 0.0|0.0   ;;  %v2709_v62 = vld [vmem:[%s3679_s4 + $0x8] sm:$0xff] }
 0xccc   : > { %v2213_v1 = vmax.f32 %v2212_v0, 0.0 }
 0xcce   : > { %2215 = vrot.lane.b32.xlu1 %v2213_v1, %s3302_s12 }
 0xcd2   : > { %2379 = vperm.xlu1 %3262, %v2376_v2  }
 0xd40   : > { %v2216_v3 = vpop.permute.xlu1 %2215 }
 0xd41   : > { %2218 = vst.msk [vmem:[#allocation3] sm:$0x1] %vm933_vm2, %v2216_v3 }
 0xd48   : > { %v2219_v6 = vld [vmem:[#allocation3] sm:$0x1] }
 0xd49   : > { %2224 = vrot.lane.b32.xlu0 %v2219_v6, %s3306_s7  ;;  %3148 = vmatpush3.msk.msra.mxu0 %vm946_vm3, %v2219_v6  ;;  %s3676_s7 = sld [smem:[#allocation14_spill]] }
 0xd4a   : > { %3150 = vmatmul.mubr.msk.f32.vlgmr.msra.gmra.mrb[16].mxu0 %vm942_vm4, %v2220_v4 }
 0xd4b   : > { %3159 = vmatprep.mubr.msk.f32.mxu0 %vm942_vm4, %v2486_v28 }
 0xd4d   : > { %2392 = vperm.xlu0 %3263, %v2389_v8  }
 0xd4f   : > { %v2482_v37 = vld [vmem:[%s3676_s7] sm:$0xff]  ;;  %v2483_v38 = vld [vmem:[%s3676_s7 + $0x8] sm:$0xff]  ;;  %v2484_v39 = vld [vmem:[%s3676_s7 + $0x10] sm:$0xff] }
 0xd50   : > { %v2485_v40 = vld [vmem:[%s3676_s7 + $0x18] sm:$0xff] }
 0xd51   : > { %v2380_v14 = vpop.permute.xlu1 %2379 }
 0xd52   : > { %v2385_v17 = vrot.slane %v2380_v14, %v3477_v7 }
 0xdbb   : > { %v2225_v10 = vpop.permute.xlu0 %2224 }
 0xdbc   : > { %3143 = vmatpush3.msk.msra.mxu1 %vm946_vm3, %v2225_v10  ;;  %v2795_v10 = vld [vmem:[#allocation7] sm:$0x1] }
 0xdbd   : > { %3145 = vmatmul.mubr.msk.f32.vlgmr.msra.gmra.mrb[14].mxu1 %vm942_vm4, %v2989_v9  ;;  %3152 = vmatprep.subr.mxu1 %v3301_v5  ;;  %v2794_v9 = vld [vmem:[%s3443_s10] sm:$0x1] }
 0xdbe   : > { %3153 = vmatpush3.msra.mxu1 %v2042_v50  ;;  %3154 = vmatprep.mubr.msk.f32.mxu1 %vm3303_vm1, %v3301_v5  ;;  %v2696_v50 = vld [vmem:[%s3678_s11 + $0x10] sm:$0xff] }
 0xdc1   : > { %3155 = vmatmul.mubr.msk.f32.vlgmr.msra.gmra.mrb[16].mxu1 %vm921_vm0, %v2388_v11 }
 0xdcc   : > { %v2393_v15 = vpop.permute.xlu0 %2392 }
 0xdcd   : > { %v2398_v20 = vrot.slane %v2393_v15, %v3477_v7 }
 0xe1d   : > { %v2372_v12 = vpop.f32.mrb[16].mxu0 }
 0xe1e   : > { %v3151_v13 = vpop.f32.mrb[17].mxu0 }
 0xe90   : > { %v2297_v16 = vpop.f32.mrb[14].mxu1 }
 0xe91   : > { %v2373_v18 = vadd.f32 %v2372_v12, %v2297_v16  ;;  %v3146_v19 = vpop.f32.mrb[15].mxu1 }
 0xe93   : > { %v2386_v21 = vadd.f32 %v2385_v17, %v2373_v18 }
 0xe94   : > { %v2468_v22 = vpop.f32.mrb[16].mxu1 }
 0xe95   : > { %v2387_v23 = vmax.f32 %v2386_v21, 0.0  ;;  %v2469_v24 = vadd.f32 %v2468_v22, %v2398_v20  ;;  %v3156_v25 = vpop.f32.mrb[17].mxu1 }
 0xe97   : > { %v2472_v26 = vadd.f32 %v2469_v24, %v2387_v23 }
 0xe99   : > { %v2473_v27 = vmax.f32 %v2472_v26, 0.0 }
 0xe9b   : > { %2475 = vrot.lane.b32.xlu1 %v2473_v27, %s3302_s12  ;;  %s3677_s12 = sld [smem:[#allocation17_spill]] }
 0xea1   : > { %v2706_v41 = vld [vmem:[%s3677_s12] sm:$0xff]  ;;  %v2707_v60 = vld [vmem:[%s3677_s12 + $0x8] sm:$0xff] }
 0xea2   : > { %3183 = vmatprep.mubr.msk.f32.mxu1 %vm2710_vm10, %v2706_v41 }
 0xf0d   : > { %v2476_v29 = vpop.permute.xlu1 %2475 }
 0xf0e   : > { %2478 = vst.msk [vmem:[#allocation2] sm:$0x1] %vm933_vm2, %v2476_v29 }
 0xf15   : > { %v2479_v7 = vld [vmem:[#allocation2] sm:$0x1] }
 0xf16   : > { %2491 = vrot.lane.b32.xlu0 %v2479_v7, %s3309_s2 }
 0xf88   : > { %v2492_v33 = vpop.permute.xlu0 %2491 }
 0xf89   : > { %3157 = vmatprep.subr.msk.mxu0 %vm946_vm3, %v2492_v33 }
 0xf8a   : > { %3158 = vmatpush3.msk.msra.mxu0 %vm946_vm3, %v2492_v33 }
 0xf8b   : > { %3160 = vmatmul.mubr.msk.f32.vlgmr.msra.gmra.mrb[18].mxu0 %vm942_vm4, %v2487_v34  ;;  %3195 = vmatprep.subr.msk.bf16.mxu0 %vm3194_vm8, %v3193_v32 }
 0xf8c   : > { %3162 = vmatprep.mubr.msk.f32.mxu0 %vm942_vm4, %v2488_v35  ;;  %3198 = vmatpush3.bf16.msk.msra.mxu0 %vm3194_vm8, %v3193_v32 }
 0xf8f   : > { %3163 = vmatmul.mubr.msk.f32.gmra.mrb[20].mxu0 %vm942_vm4, %v2489_v36 }
 0xf90   : > { %3169 = vmatprep.mubr.msk.f32.mxu0 %vm2592_vm9, %v2482_v37 }
 0xf93   : > { %3170 = vmatmul.mubr.msk.f32.vlgmr.msra.gmra.mrb[18].mxu0 %vm2592_vm9, %v2483_v38 }
 0xf94   : > { %3172 = vmatprep.mubr.msk.f32.mxu0 %vm2592_vm9, %v2484_v39 }
 0xf97   : > { %3173 = vmatmul.mubr.msk.f32.gmra.mrb[20].mxu0 %vm2592_vm9, %v2485_v40 }
0x1066   : > { %v3171_v44 = vpop.f32.mrb[18].mxu0 }
0x1067   : > { %v2699_v45 = vadd.f32 %v3171_v44, %v2695_v42  ;;  %v2675_v46 = vpop.f32.mrb[19].mxu0 }
0x1068   : > { %v2698_v47 = vadd.f32 %v2694_v43, %v2675_v46 }
0x1069   : > { %v2703_v49 = vmax.f32 %v2699_v45, 0.0 }
0x106a   : > { %v2702_v51 = vmax.f32 %v2698_v47, 0.0  ;;  %v3174_v52 = vpop.f32.mrb[20].mxu0 }
0x106b   : > { %v2701_v53 = vadd.f32 %v3174_v52, %v2697_v48  ;;  %v2685_v54 = vpop.f32.mrb[21].mxu0 }
0x106c   : > { %v3199_v55 = vpack.c.bf16 %v2703_v49, %v2702_v51  ;;  %v2700_v56 = vadd.f32 %v2696_v50, %v2685_v54 }
0x106d   : > { %v2705_v57 = vmax.f32 %v2701_v53, 0.0 }
0x106e   : > { %v2704_v58 = vmax.f32 %v2700_v56, 0.0  ;;  %3200 = vmatprep.subr.bf16.mxu1 %v3199_v55 }
0x106f   : > { %3202 = vmatpush3.bf16.msra.mxu1 %v3199_v55 }
0x1070   : > { %v3203_v59 = vpack.c.bf16 %v2705_v57, %v2704_v58 }
0x1072   : > { %3204 = vmatprep.subr.bf16.mxu1 %v3203_v59 }
0x1073   : > { %3206 = vmatpush3.bf16.msra.mxu1 %v3203_v59 }
0x1074   : > { %3207 = vmatprep.subr.bf16.mxu1 %v3311_v61 }
0x1076   : > { %3184 = vmatmul.mubr.msk.f32.vlgmr.msra.gmra.mrb[18].mxu1 %vm2710_vm10, %v2707_v60 }
0x1077   : > { %3190 = vmatprep.mubr.msk.f32.mxu1 %vm3303_vm1, %v3301_v5 }
0x1149   : > { %v3185_v0 = vpop.f32.mrb[18].mxu1 }
0x114a   : > { %v2789_v1 = vadd.f32 %v3185_v0, %v2709_v62  ;;  %v2783_v2 = vpop.f32.mrb[19].mxu1 }
0x114b   : > { %v2784_v3 = vadd.f32 %v2783_v2, %v2708_v63 }
0x114c   : > { %v2793_v4 = vmax.f32 %v2789_v1, 0.0 }
0x114d   : > { %v2792_v6 = vmax.f32 %v2784_v3, 0.0 }
0x114f   : > { %v3208_v8 = vpack.c.bf16 %v2793_v4, %v2792_v6 }
0x1151   : > { %3209 = vmatpush3.bf16.msra.mxu1 %v3208_v8 }
0x1154   : > { %3191 = vmatmul.mubr.msk.f32.vlgmr.msra.gmra.mrb[20].mxu1 %vm2796_vm11, %v2794_v9 }
0x1227   : > { %v2866_v5 = vpop.f32.mrb[20].mxu1 }
0x1228   : > { %v2867_v11 = vadd.f32 %v2866_v5, %v2795_v10  ;;  %v3192_v12 = vpop.f32.mrb[21].mxu1 }
0x122a   : > { %2871 = vst.msk [vmem:[%s920_s15] sm:$0x1] %vm2870_vm12, %v2867_v11 }
0x122b PF: > { %s77_s9 = sadd.s32 1, %s3270_s9  }
0x122c   : > { %p74_p4 = scmp.ge.s32.totalorder %s77_s9, 6  }
0x122e   :  { %76 = sbr.rel (!%p74_p4) target bundleno = 50 (0x32), region = 206 }

</bundles_post_ra>
